<compile_context>
chip_gen: v5e
topology: v5e:2x2
jax: 0.10.0
libtpu: 0.0.40
codegen_flags: <defaults>
</compile_context>

<pallas_src>
import jax
import jax.numpy as jnp
import numpy as np
from jax import lax
from jax.experimental import pallas as pl
from jax.experimental.pallas import tpu as pltpu


def _sigmoid(x):
    return 1.0 / (1.0 + jnp.exp(-x))


def bigru_forward(tokens, emb_table, wih, whh, bih, bhh, wfc, bfc):
    """tokens: (B, T) int32. Returns (B, T, O) float32 (batch_first).

    Parameter layout (pre-transposed / packed relative to torch):
      wih, whh : (2, H, 3H)  gate columns ordered [r | z | n], dirs [fwd, bwd]
      bih, bhh : (2, 1, 3H)
      wfc      : (2, H, O)   rows of fc.weight.T split into [fwd-half, bwd-half]
      bfc      : (1, O)
    """
    B, T = tokens.shape
    H = emb_table.shape[1]
    O = wfc.shape[-1]
    TB = T * B

    # Embedding gather (data-dependent) stays in XLA; gather directly into a
    # time-major layout and flatten so the kernel needs no in-kernel reshapes.
    x2d = jnp.take(emb_table, tokens.T, axis=0).astype(jnp.float32)  # (T, B, H)
    x2d = x2d.reshape(TB, H)                                         # (T*B, H)

    def kernel(x_ref, wih_ref, whh_ref, bih_ref, bhh_ref, wfc_ref, bfc_ref,
               out_ref, hsf_ref, hsb_ref):
        x = x_ref[...]                                  # (T*B, H)
        wih_v = wih_ref[...]                            # (2, H, 3H)
        whh_v = whh_ref[...]                            # (2, H, 3H)
        bih_v = bih_ref[...]                            # (2, 1, 3H)
        bhh_v = bhh_ref[...]                            # (2, 1, 3H)

        # ---- Prologue: hoisted input projections (off the serial path). ----
        xwf = jnp.dot(x, wih_v[0], preferred_element_type=jnp.float32) + bih_v[0]
        xwb = jnp.dot(x, wih_v[1], preferred_element_type=jnp.float32) + bih_v[1]

        def run_direction(xw, hs_ref, w_hh, b_hh, reverse):
            # Hoisted out of the loop: packed hidden weights + bias broadcast.
            b_hh_b = jnp.broadcast_to(b_hh, (B, 3 * H))
            h = jnp.zeros((B, H), jnp.float32)
            steps = range(T - 1, -1, -1) if reverse else range(T)
            # Fully unrolled at trace time (T is small and static) ==
            # lax.fori_loop(..., unroll=True): straight-line code, static
            # row offsets, no per-step loop/grid machinery.
            for t in steps:
                row = t * B
                xw_t = xw[row:row + B, :]               # (B, 3H) static slice
                hw = jnp.dot(h, w_hh,
                             preferred_element_type=jnp.float32) + b_hh_b
                r = _sigmoid(xw_t[:, 0:H] + hw[:, 0:H])
                z = _sigmoid(xw_t[:, H:2 * H] + hw[:, H:2 * H])
                n = jnp.tanh(xw_t[:, 2 * H:3 * H] + r * hw[:, 2 * H:3 * H])
                h = (1.0 - z) * n + z * h
                hs_ref[pl.ds(row, B), :] = h            # collect h_t for FC

        run_direction(xwf, hsf_ref, whh_v[0], bhh_v[0], reverse=False)
        run_direction(xwb, hsb_ref, whh_v[1], bhh_v[1], reverse=True)

        # ---- Epilogue: hoisted FC over all T*B rows (one matmul per dir). ----
        wfc_v = wfc_ref[...]                            # (2, H, O)
        out = (jnp.dot(hsf_ref[...], wfc_v[0], preferred_element_type=jnp.float32)
               + jnp.dot(hsb_ref[...], wfc_v[1], preferred_element_type=jnp.float32)
               + bfc_ref[...])                          # (T*B, O)
        out_ref[...] = out.astype(out_ref.dtype)

    out2d = pl.pallas_call(
        kernel,
        out_shape=jax.ShapeDtypeStruct((TB, O), jnp.float32),
        in_specs=[pl.BlockSpec(memory_space=pltpu.MemorySpace.VMEM)] * 7,
        out_specs=pl.BlockSpec(memory_space=pltpu.MemorySpace.VMEM),
        scratch_shapes=[
            pltpu.VMEM((TB, H), jnp.float32),   # forward hidden states h_t
            pltpu.VMEM((TB, H), jnp.float32),   # backward hidden states h_t
        ],
        compiler_params=pltpu.CompilerParams(
            # Everything here (weights + activations + scratch) is ~100 KB;
            # an explicit modest limit keeps this safe on v7x's smaller VMEM.
            vmem_limit_bytes=32 * 1024 * 1024),
    )(x2d, wih, whh, bih, bhh, wfc, bfc)

    # (T*B, O) -> (T, B, O) -> (B, T, O): tiny layout glue, done in XLA.
    # TODO(synk): at realistic B, shard the two directions / batch across v7x's
    # second TensorCore via a "parallel" grid axis.
    return jnp.transpose(out2d.reshape(T, B, O), (1, 0, 2))


def reference_forward(tokens, emb_table, wih, whh, bih, bhh, wfc, bfc):
    """Pure-JAX reference of the same bidirectional-GRU forward pass."""
    B, T = tokens.shape
    H = emb_table.shape[1]
    x_tm = jnp.take(emb_table, tokens.T, axis=0).astype(jnp.float32)  # (T,B,H)

    def run_dir(d, reverse):
        def step(h, x_t):
            xw = x_t @ wih[d] + bih[d]                  # (B, 3H)
            hw = h @ whh[d] + bhh[d]                    # (B, 3H)
            r = _sigmoid(xw[:, 0:H] + hw[:, 0:H])
            z = _sigmoid(xw[:, H:2 * H] + hw[:, H:2 * H])
            n = jnp.tanh(xw[:, 2 * H:] + r * hw[:, 2 * H:])
            h_new = (1.0 - z) * n + z * h
            return h_new, h_new

        h0 = jnp.zeros((B, H), jnp.float32)
        _, hs = lax.scan(step, h0, x_tm, reverse=reverse)
        return hs                                       # (T, B, H), fwd-time order

    hf = run_dir(0, reverse=False)
    hb = run_dir(1, reverse=True)
    out = hf @ wfc[0] + hb @ wfc[1] + bfc               # (T, B, O)
    return jnp.transpose(out, (1, 0, 2))                # (B, T, O)


if __name__ == "__main__":
    # Small shapes consistent with the module's forward.
    input_dim = 16    # vocab size
    hidden_dim = 32
    output_dim = 8
    B, T = 2, 8
    H, O = hidden_dim, output_dim

    key = jax.random.PRNGKey(0)
    (k_emb, k_wih, k_whh, k_bih, k_bhh,
     k_wfc, k_bfc, k_tok) = jax.random.split(key, 8)

    scale = 1.0 / np.sqrt(hidden_dim)
    emb_table = jax.random.normal(k_emb, (input_dim, H), jnp.float32)
    # GRU weights stored pre-transposed vs torch (so the kernel does x @ W),
    # gate columns ordered [r | z | n], leading axis = [forward, backward].
    wih = jax.random.uniform(k_wih, (2, H, 3 * H), jnp.float32, -scale, scale)
    whh = jax.random.uniform(k_whh, (2, H, 3 * H), jnp.float32, -scale, scale)
    bih = jax.random.uniform(k_bih, (2, 1, 3 * H), jnp.float32, -scale, scale)
    bhh = jax.random.uniform(k_bhh, (2, 1, 3 * H), jnp.float32, -scale, scale)
    # fc: Linear(2H -> O); fc.weight.T split into forward / backward halves.
    wfc = jax.random.uniform(k_wfc, (2, H, O), jnp.float32, -scale, scale)
    bfc = jax.random.uniform(k_bfc, (1, O), jnp.float32, -scale, scale)

    tokens = jax.random.randint(k_tok, (B, T), 0, input_dim, jnp.int32)

    out = bigru_forward(tokens, emb_table, wih, whh, bih, bhh, wfc, bfc)
    out = jax.block_until_ready(out)

    ref = reference_forward(tokens, emb_table, wih, whh, bih, bhh, wfc, bfc)
    np.testing.assert_allclose(np.asarray(out), np.asarray(ref),
                               rtol=1e-4, atol=1e-4)

    assert out.shape == (B, T, output_dim)
    print("KERNEL_OK")
</pallas_src>

<mosaic_0001>
module attributes {stable_mosaic.version = 11 : i64} {
  func.func @kernel(%arg0: memref<16x32xf32, #tpu.memory_space<vmem>>, %arg1: memref<2x32x96xf32, #tpu.memory_space<vmem>>, %arg2: memref<2x32x96xf32, #tpu.memory_space<vmem>>, %arg3: memref<2x1x96xf32, #tpu.memory_space<vmem>>, %arg4: memref<2x1x96xf32, #tpu.memory_space<vmem>>, %arg5: memref<2x32x8xf32, #tpu.memory_space<vmem>>, %arg6: memref<1x8xf32, #tpu.memory_space<vmem>>, %arg7: memref<16x8xf32, #tpu.memory_space<vmem>>, %arg8: memref<16x32xf32, #tpu.memory_space<vmem>>, %arg9: memref<16x32xf32, #tpu.memory_space<vmem>>) attributes {dimension_semantics = [], scalar_prefetch = 0 : i64, scratch_operands = 2 : i64, tpu.core_type = #tpu.core_type<tc>} {
    %c0 = arith.constant 0 : index
    %c0_0 = arith.constant 0 : index
    %0 = vector.load %arg0[%c0, %c0_0] : memref<16x32xf32, #tpu.memory_space<vmem>>, vector<16x32xf32>
    %c0_1 = arith.constant 0 : index
    %c0_2 = arith.constant 0 : index
    %c0_3 = arith.constant 0 : index
    %1 = vector.load %arg1[%c0_1, %c0_2, %c0_3] : memref<2x32x96xf32, #tpu.memory_space<vmem>>, vector<2x32x96xf32>
    %c0_4 = arith.constant 0 : index
    %c0_5 = arith.constant 0 : index
    %c0_6 = arith.constant 0 : index
    %2 = vector.load %arg2[%c0_4, %c0_5, %c0_6] : memref<2x32x96xf32, #tpu.memory_space<vmem>>, vector<2x32x96xf32>
    %c0_7 = arith.constant 0 : index
    %c0_8 = arith.constant 0 : index
    %c0_9 = arith.constant 0 : index
    %3 = vector.load %arg3[%c0_7, %c0_8, %c0_9] : memref<2x1x96xf32, #tpu.memory_space<vmem>>, vector<2x1x96xf32>
    %c0_10 = arith.constant 0 : index
    %c0_11 = arith.constant 0 : index
    %c0_12 = arith.constant 0 : index
    %4 = vector.load %arg4[%c0_10, %c0_11, %c0_12] : memref<2x1x96xf32, #tpu.memory_space<vmem>>, vector<2x1x96xf32>
    %5 = vector.extract_strided_slice %1 {offsets = [0, 0, 0], sizes = [1, 32, 96], strides = [1, 1, 1]} : vector<2x32x96xf32> to vector<1x32x96xf32>
    %6 = vector.shape_cast %5 : vector<1x32x96xf32> to vector<32x96xf32>
    %cst = arith.constant dense<0.000000e+00> : vector<16x96xf32>
    %7 = tpu.matmul %0, %6, %cst {dimension_numbers = #tpu.dot_dimension_numbers<[1], [0], [0], [1], [0, 0, 1, 1], [], []>} : vector<16x32xf32>, vector<32x96xf32>, vector<16x96xf32> -> vector<16x96xf32>
    %8 = vector.extract_strided_slice %3 {offsets = [0, 0, 0], sizes = [1, 1, 96], strides = [1, 1, 1]} : vector<2x1x96xf32> to vector<1x1x96xf32>
    %9 = vector.shape_cast %8 : vector<1x1x96xf32> to vector<1x96xf32>
    %10 = vector.broadcast %9 : vector<1x96xf32> to vector<16x96xf32>
    %11 = arith.addf %7, %10 : vector<16x96xf32>
    %12 = vector.extract_strided_slice %1 {offsets = [1, 0, 0], sizes = [1, 32, 96], strides = [1, 1, 1]} : vector<2x32x96xf32> to vector<1x32x96xf32>
    %13 = vector.shape_cast %12 : vector<1x32x96xf32> to vector<32x96xf32>
    %cst_13 = arith.constant dense<0.000000e+00> : vector<16x96xf32>
    %14 = tpu.matmul %0, %13, %cst_13 {dimension_numbers = #tpu.dot_dimension_numbers<[1], [0], [0], [1], [0, 0, 1, 1], [], []>} : vector<16x32xf32>, vector<32x96xf32>, vector<16x96xf32> -> vector<16x96xf32>
    %15 = vector.extract_strided_slice %3 {offsets = [1, 0, 0], sizes = [1, 1, 96], strides = [1, 1, 1]} : vector<2x1x96xf32> to vector<1x1x96xf32>
    %16 = vector.shape_cast %15 : vector<1x1x96xf32> to vector<1x96xf32>
    %17 = vector.broadcast %16 : vector<1x96xf32> to vector<16x96xf32>
    %18 = arith.addf %14, %17 : vector<16x96xf32>
    %19 = vector.extract_strided_slice %2 {offsets = [0, 0, 0], sizes = [1, 32, 96], strides = [1, 1, 1]} : vector<2x32x96xf32> to vector<1x32x96xf32>
    %20 = vector.shape_cast %19 : vector<1x32x96xf32> to vector<32x96xf32>
    %21 = vector.extract_strided_slice %4 {offsets = [0, 0, 0], sizes = [1, 1, 96], strides = [1, 1, 1]} : vector<2x1x96xf32> to vector<1x1x96xf32>
    %22 = vector.shape_cast %21 : vector<1x1x96xf32> to vector<1x96xf32>
    %23 = vector.shape_cast %22 : vector<1x96xf32> to vector<1x96xf32>
    %24 = vector.broadcast %23 : vector<1x96xf32> to vector<2x96xf32>
    %cst_14 = arith.constant 0.000000e+00 : f32
    %25 = vector.broadcast %cst_14 : f32 to vector<2x32xf32>
    %26 = vector.extract_strided_slice %11 {offsets = [0, 0], sizes = [2, 96], strides = [1, 1]} : vector<16x96xf32> to vector<2x96xf32>
    %cst_15 = arith.constant dense<0.000000e+00> : vector<2x96xf32>
    %27 = tpu.matmul %25, %20, %cst_15 {dimension_numbers = #tpu.dot_dimension_numbers<[1], [0], [0], [1], [0, 0, 1, 1], [], []>} : vector<2x32xf32>, vector<32x96xf32>, vector<2x96xf32> -> vector<2x96xf32>
    %28 = arith.addf %27, %24 : vector<2x96xf32>
    %29 = vector.extract_strided_slice %26 {offsets = [0, 0], sizes = [2, 32], strides = [1, 1]} : vector<2x96xf32> to vector<2x32xf32>
    %30 = vector.extract_strided_slice %28 {offsets = [0, 0], sizes = [2, 32], strides = [1, 1]} : vector<2x96xf32> to vector<2x32xf32>
    %31 = arith.addf %29, %30 : vector<2x32xf32>
    %cst_16 = arith.constant 0.000000e+00 : f32
    %32 = vector.broadcast %cst_16 : f32 to vector<2x32xf32>
    %33 = arith.subf %32, %31 : vector<2x32xf32>
    %34 = math.exp %33 : vector<2x32xf32>
    %cst_17 = arith.constant 1.000000e+00 : f32
    %35 = vector.broadcast %cst_17 : f32 to vector<2x32xf32>
    %36 = arith.addf %35, %34 : vector<2x32xf32>
    %cst_18 = arith.constant 1.000000e+00 : f32
    %37 = vector.broadcast %cst_18 : f32 to vector<2x32xf32>
    %38 = arith.divf %37, %36 : vector<2x32xf32>
    %39 = vector.extract_strided_slice %26 {offsets = [0, 32], sizes = [2, 32], strides = [1, 1]} : vector<2x96xf32> to vector<2x32xf32>
    %40 = vector.extract_strided_slice %28 {offsets = [0, 32], sizes = [2, 32], strides = [1, 1]} : vector<2x96xf32> to vector<2x32xf32>
    %41 = arith.addf %39, %40 : vector<2x32xf32>
    %cst_19 = arith.constant 0.000000e+00 : f32
    %42 = vector.broadcast %cst_19 : f32 to vector<2x32xf32>
    %43 = arith.subf %42, %41 : vector<2x32xf32>
    %44 = math.exp %43 : vector<2x32xf32>
    %cst_20 = arith.constant 1.000000e+00 : f32
    %45 = vector.broadcast %cst_20 : f32 to vector<2x32xf32>
    %46 = arith.addf %45, %44 : vector<2x32xf32>
    %cst_21 = arith.constant 1.000000e+00 : f32
    %47 = vector.broadcast %cst_21 : f32 to vector<2x32xf32>
    %48 = arith.divf %47, %46 : vector<2x32xf32>
    %49 = vector.extract_strided_slice %26 {offsets = [0, 64], sizes = [2, 32], strides = [1, 1]} : vector<2x96xf32> to vector<2x32xf32>
    %50 = vector.extract_strided_slice %28 {offsets = [0, 64], sizes = [2, 32], strides = [1, 1]} : vector<2x96xf32> to vector<2x32xf32>
    %51 = arith.mulf %38, %50 : vector<2x32xf32>
    %52 = arith.addf %49, %51 : vector<2x32xf32>
    %53 = math.tanh %52 : vector<2x32xf32>
    %cst_22 = arith.constant 1.000000e+00 : f32
    %54 = vector.broadcast %cst_22 : f32 to vector<2x32xf32>
    %55 = arith.subf %54, %48 : vector<2x32xf32>
    %56 = arith.mulf %55, %53 : vector<2x32xf32>
    %57 = arith.mulf %48, %25 : vector<2x32xf32>
    %58 = arith.addf %56, %57 : vector<2x32xf32>
    %c0_23 = arith.constant 0 : index
    %c0_24 = arith.constant 0 : index
    %59 = vector.load %arg8[%c0_23, %c0_24] : memref<16x32xf32, #tpu.memory_space<vmem>>, vector<2x32xf32>
    tpu.vector_store %arg8[%c0_23, %c0_24], %58 {strides = array<i32>} : memref<16x32xf32, #tpu.memory_space<vmem>>, vector<2x32xf32>,
    %60 = vector.extract_strided_slice %11 {offsets = [2, 0], sizes = [2, 96], strides = [1, 1]} : vector<16x96xf32> to vector<2x96xf32>
    %cst_25 = arith.constant dense<0.000000e+00> : vector<2x96xf32>
    %61 = tpu.matmul %58, %20, %cst_25 {dimension_numbers = #tpu.dot_dimension_numbers<[1], [0], [0], [1], [0, 0, 1, 1], [], []>} : vector<2x32xf32>, vector<32x96xf32>, vector<2x96xf32> -> vector<2x96xf32>
    %62 = arith.addf %61, %24 : vector<2x96xf32>
    %63 = vector.extract_strided_slice %60 {offsets = [0, 0], sizes = [2, 32], strides = [1, 1]} : vector<2x96xf32> to vector<2x32xf32>
    %64 = vector.extract_strided_slice %62 {offsets = [0, 0], sizes = [2, 32], strides = [1, 1]} : vector<2x96xf32> to vector<2x32xf32>
    %65 = arith.addf %63, %64 : vector<2x32xf32>
    %cst_26 = arith.constant 0.000000e+00 : f32
    %66 = vector.broadcast %cst_26 : f32 to vector<2x32xf32>
    %67 = arith.subf %66, %65 : vector<2x32xf32>
    %68 = math.exp %67 : vector<2x32xf32>
    %cst_27 = arith.constant 1.000000e+00 : f32
    %69 = vector.broadcast %cst_27 : f32 to vector<2x32xf32>
    %70 = arith.addf %69, %68 : vector<2x32xf32>
    %cst_28 = arith.constant 1.000000e+00 : f32
    %71 = vector.broadcast %cst_28 : f32 to vector<2x32xf32>
    %72 = arith.divf %71, %70 : vector<2x32xf32>
    %73 = vector.extract_strided_slice %60 {offsets = [0, 32], sizes = [2, 32], strides = [1, 1]} : vector<2x96xf32> to vector<2x32xf32>
    %74 = vector.extract_strided_slice %62 {offsets = [0, 32], sizes = [2, 32], strides = [1, 1]} : vector<2x96xf32> to vector<2x32xf32>
    %75 = arith.addf %73, %74 : vector<2x32xf32>
    %cst_29 = arith.constant 0.000000e+00 : f32
    %76 = vector.broadcast %cst_29 : f32 to vector<2x32xf32>
    %77 = arith.subf %76, %75 : vector<2x32xf32>
    %78 = math.exp %77 : vector<2x32xf32>
    %cst_30 = arith.constant 1.000000e+00 : f32
    %79 = vector.broadcast %cst_30 : f32 to vector<2x32xf32>
    %80 = arith.addf %79, %78 : vector<2x32xf32>
    %cst_31 = arith.constant 1.000000e+00 : f32
    %81 = vector.broadcast %cst_31 : f32 to vector<2x32xf32>
    %82 = arith.divf %81, %80 : vector<2x32xf32>
    %83 = vector.extract_strided_slice %60 {offsets = [0, 64], sizes = [2, 32], strides = [1, 1]} : vector<2x96xf32> to vector<2x32xf32>
    %84 = vector.extract_strided_slice %62 {offsets = [0, 64], sizes = [2, 32], strides = [1, 1]} : vector<2x96xf32> to vector<2x32xf32>
    %85 = arith.mulf %72, %84 : vector<2x32xf32>
    %86 = arith.addf %83, %85 : vector<2x32xf32>
    %87 = math.tanh %86 : vector<2x32xf32>
    %cst_32 = arith.constant 1.000000e+00 : f32
    %88 = vector.broadcast %cst_32 : f32 to vector<2x32xf32>
    %89 = arith.subf %88, %82 : vector<2x32xf32>
    %90 = arith.mulf %89, %87 : vector<2x32xf32>
    %91 = arith.mulf %82, %58 : vector<2x32xf32>
    %92 = arith.addf %90, %91 : vector<2x32xf32>
    %c2 = arith.constant 2 : index
    %c0_33 = arith.constant 0 : index
    %93 = vector.load %arg8[%c2, %c0_33] : memref<16x32xf32, #tpu.memory_space<vmem>>, vector<2x32xf32>
    tpu.vector_store %arg8[%c2, %c0_33], %92 {strides = array<i32>} : memref<16x32xf32, #tpu.memory_space<vmem>>, vector<2x32xf32>,
    %94 = vector.extract_strided_slice %11 {offsets = [4, 0], sizes = [2, 96], strides = [1, 1]} : vector<16x96xf32> to vector<2x96xf32>
    %cst_34 = arith.constant dense<0.000000e+00> : vector<2x96xf32>
    %95 = tpu.matmul %92, %20, %cst_34 {dimension_numbers = #tpu.dot_dimension_numbers<[1], [0], [0], [1], [0, 0, 1, 1], [], []>} : vector<2x32xf32>, vector<32x96xf32>, vector<2x96xf32> -> vector<2x96xf32>
    %96 = arith.addf %95, %24 : vector<2x96xf32>
    %97 = vector.extract_strided_slice %94 {offsets = [0, 0], sizes = [2, 32], strides = [1, 1]} : vector<2x96xf32> to vector<2x32xf32>
    %98 = vector.extract_strided_slice %96 {offsets = [0, 0], sizes = [2, 32], strides = [1, 1]} : vector<2x96xf32> to vector<2x32xf32>
    %99 = arith.addf %97, %98 : vector<2x32xf32>
    %cst_35 = arith.constant 0.000000e+00 : f32
    %100 = vector.broadcast %cst_35 : f32 to vector<2x32xf32>
    %101 = arith.subf %100, %99 : vector<2x32xf32>
    %102 = math.exp %101 : vector<2x32xf32>
    %cst_36 = arith.constant 1.000000e+00 : f32
    %103 = vector.broadcast %cst_36 : f32 to vector<2x32xf32>
    %104 = arith.addf %103, %102 : vector<2x32xf32>
    %cst_37 = arith.constant 1.000000e+00 : f32
    %105 = vector.broadcast %cst_37 : f32 to vector<2x32xf32>
    %106 = arith.divf %105, %104 : vector<2x32xf32>
    %107 = vector.extract_strided_slice %94 {offsets = [0, 32], sizes = [2, 32], strides = [1, 1]} : vector<2x96xf32> to vector<2x32xf32>
    %108 = vector.extract_strided_slice %96 {offsets = [0, 32], sizes = [2, 32], strides = [1, 1]} : vector<2x96xf32> to vector<2x32xf32>
    %109 = arith.addf %107, %108 : vector<2x32xf32>
    %cst_38 = arith.constant 0.000000e+00 : f32
    %110 = vector.broadcast %cst_38 : f32 to vector<2x32xf32>
    %111 = arith.subf %110, %109 : vector<2x32xf32>
    %112 = math.exp %111 : vector<2x32xf32>
    %cst_39 = arith.constant 1.000000e+00 : f32
    %113 = vector.broadcast %cst_39 : f32 to vector<2x32xf32>
    %114 = arith.addf %113, %112 : vector<2x32xf32>
    %cst_40 = arith.constant 1.000000e+00 : f32
    %115 = vector.broadcast %cst_40 : f32 to vector<2x32xf32>
    %116 = arith.divf %115, %114 : vector<2x32xf32>
    %117 = vector.extract_strided_slice %94 {offsets = [0, 64], sizes = [2, 32], strides = [1, 1]} : vector<2x96xf32> to vector<2x32xf32>
    %118 = vector.extract_strided_slice %96 {offsets = [0, 64], sizes = [2, 32], strides = [1, 1]} : vector<2x96xf32> to vector<2x32xf32>
    %119 = arith.mulf %106, %118 : vector<2x32xf32>
    %120 = arith.addf %117, %119 : vector<2x32xf32>
    %121 = math.tanh %120 : vector<2x32xf32>
    %cst_41 = arith.constant 1.000000e+00 : f32
    %122 = vector.broadcast %cst_41 : f32 to vector<2x32xf32>
    %123 = arith.subf %122, %116 : vector<2x32xf32>
    %124 = arith.mulf %123, %121 : vector<2x32xf32>
    %125 = arith.mulf %116, %92 : vector<2x32xf32>
    %126 = arith.addf %124, %125 : vector<2x32xf32>
    %c4 = arith.constant 4 : index
    %c0_42 = arith.constant 0 : index
    %127 = vector.load %arg8[%c4, %c0_42] : memref<16x32xf32, #tpu.memory_space<vmem>>, vector<2x32xf32>
    tpu.vector_store %arg8[%c4, %c0_42], %126 {strides = array<i32>} : memref<16x32xf32, #tpu.memory_space<vmem>>, vector<2x32xf32>,
    %128 = vector.extract_strided_slice %11 {offsets = [6, 0], sizes = [2, 96], strides = [1, 1]} : vector<16x96xf32> to vector<2x96xf32>
    %cst_43 = arith.constant dense<0.000000e+00> : vector<2x96xf32>
    %129 = tpu.matmul %126, %20, %cst_43 {dimension_numbers = #tpu.dot_dimension_numbers<[1], [0], [0], [1], [0, 0, 1, 1], [], []>} : vector<2x32xf32>, vector<32x96xf32>, vector<2x96xf32> -> vector<2x96xf32>
    %130 = arith.addf %129, %24 : vector<2x96xf32>
    %131 = vector.extract_strided_slice %128 {offsets = [0, 0], sizes = [2, 32], strides = [1, 1]} : vector<2x96xf32> to vector<2x32xf32>
    %132 = vector.extract_strided_slice %130 {offsets = [0, 0], sizes = [2, 32], strides = [1, 1]} : vector<2x96xf32> to vector<2x32xf32>
    %133 = arith.addf %131, %132 : vector<2x32xf32>
    %cst_44 = arith.constant 0.000000e+00 : f32
    %134 = vector.broadcast %cst_44 : f32 to vector<2x32xf32>
    %135 = arith.subf %134, %133 : vector<2x32xf32>
    %136 = math.exp %135 : vector<2x32xf32>
    %cst_45 = arith.constant 1.000000e+00 : f32
    %137 = vector.broadcast %cst_45 : f32 to vector<2x32xf32>
    %138 = arith.addf %137, %136 : vector<2x32xf32>
    %cst_46 = arith.constant 1.000000e+00 : f32
    %139 = vector.broadcast %cst_46 : f32 to vector<2x32xf32>
    %140 = arith.divf %139, %138 : vector<2x32xf32>
    %141 = vector.extract_strided_slice %128 {offsets = [0, 32], sizes = [2, 32], strides = [1, 1]} : vector<2x96xf32> to vector<2x32xf32>
    %142 = vector.extract_strided_slice %130 {offsets = [0, 32], sizes = [2, 32], strides = [1, 1]} : vector<2x96xf32> to vector<2x32xf32>
    %143 = arith.addf %141, %142 : vector<2x32xf32>
    %cst_47 = arith.constant 0.000000e+00 : f32
    %144 = vector.broadcast %cst_47 : f32 to vector<2x32xf32>
    %145 = arith.subf %144, %143 : vector<2x32xf32>
    %146 = math.exp %145 : vector<2x32xf32>
    %cst_48 = arith.constant 1.000000e+00 : f32
    %147 = vector.broadcast %cst_48 : f32 to vector<2x32xf32>
    %148 = arith.addf %147, %146 : vector<2x32xf32>
    %cst_49 = arith.constant 1.000000e+00 : f32
    %149 = vector.broadcast %cst_49 : f32 to vector<2x32xf32>
    %150 = arith.divf %149, %148 : vector<2x32xf32>
    %151 = vector.extract_strided_slice %128 {offsets = [0, 64], sizes = [2, 32], strides = [1, 1]} : vector<2x96xf32> to vector<2x32xf32>
    %152 = vector.extract_strided_slice %130 {offsets = [0, 64], sizes = [2, 32], strides = [1, 1]} : vector<2x96xf32> to vector<2x32xf32>
    %153 = arith.mulf %140, %152 : vector<2x32xf32>
    %154 = arith.addf %151, %153 : vector<2x32xf32>
    %155 = math.tanh %154 : vector<2x32xf32>
    %cst_50 = arith.constant 1.000000e+00 : f32
    %156 = vector.broadcast %cst_50 : f32 to vector<2x32xf32>
    %157 = arith.subf %156, %150 : vector<2x32xf32>
    %158 = arith.mulf %157, %155 : vector<2x32xf32>
    %159 = arith.mulf %150, %126 : vector<2x32xf32>
    %160 = arith.addf %158, %159 : vector<2x32xf32>
    %c6 = arith.constant 6 : index
    %c0_51 = arith.constant 0 : index
    %161 = vector.load %arg8[%c6, %c0_51] : memref<16x32xf32, #tpu.memory_space<vmem>>, vector<2x32xf32>
    tpu.vector_store %arg8[%c6, %c0_51], %160 {strides = array<i32>} : memref<16x32xf32, #tpu.memory_space<vmem>>, vector<2x32xf32>,
    %162 = vector.extract_strided_slice %11 {offsets = [8, 0], sizes = [2, 96], strides = [1, 1]} : vector<16x96xf32> to vector<2x96xf32>
    %cst_52 = arith.constant dense<0.000000e+00> : vector<2x96xf32>
    %163 = tpu.matmul %160, %20, %cst_52 {dimension_numbers = #tpu.dot_dimension_numbers<[1], [0], [0], [1], [0, 0, 1, 1], [], []>} : vector<2x32xf32>, vector<32x96xf32>, vector<2x96xf32> -> vector<2x96xf32>
    %164 = arith.addf %163, %24 : vector<2x96xf32>
    %165 = vector.extract_strided_slice %162 {offsets = [0, 0], sizes = [2, 32], strides = [1, 1]} : vector<2x96xf32> to vector<2x32xf32>
    %166 = vector.extract_strided_slice %164 {offsets = [0, 0], sizes = [2, 32], strides = [1, 1]} : vector<2x96xf32> to vector<2x32xf32>
    %167 = arith.addf %165, %166 : vector<2x32xf32>
    %cst_53 = arith.constant 0.000000e+00 : f32
    %168 = vector.broadcast %cst_53 : f32 to vector<2x32xf32>
    %169 = arith.subf %168, %167 : vector<2x32xf32>
    %170 = math.exp %169 : vector<2x32xf32>
    %cst_54 = arith.constant 1.000000e+00 : f32
    %171 = vector.broadcast %cst_54 : f32 to vector<2x32xf32>
    %172 = arith.addf %171, %170 : vector<2x32xf32>
    %cst_55 = arith.constant 1.000000e+00 : f32
    %173 = vector.broadcast %cst_55 : f32 to vector<2x32xf32>
    %174 = arith.divf %173, %172 : vector<2x32xf32>
    %175 = vector.extract_strided_slice %162 {offsets = [0, 32], sizes = [2, 32], strides = [1, 1]} : vector<2x96xf32> to vector<2x32xf32>
    %176 = vector.extract_strided_slice %164 {offsets = [0, 32], sizes = [2, 32], strides = [1, 1]} : vector<2x96xf32> to vector<2x32xf32>
    %177 = arith.addf %175, %176 : vector<2x32xf32>
    %cst_56 = arith.constant 0.000000e+00 : f32
    %178 = vector.broadcast %cst_56 : f32 to vector<2x32xf32>
    %179 = arith.subf %178, %177 : vector<2x32xf32>
    %180 = math.exp %179 : vector<2x32xf32>
    %cst_57 = arith.constant 1.000000e+00 : f32
    %181 = vector.broadcast %cst_57 : f32 to vector<2x32xf32>
    %182 = arith.addf %181, %180 : vector<2x32xf32>
    %cst_58 = arith.constant 1.000000e+00 : f32
    %183 = vector.broadcast %cst_58 : f32 to vector<2x32xf32>
    %184 = arith.divf %183, %182 : vector<2x32xf32>
    %185 = vector.extract_strided_slice %162 {offsets = [0, 64], sizes = [2, 32], strides = [1, 1]} : vector<2x96xf32> to vector<2x32xf32>
    %186 = vector.extract_strided_slice %164 {offsets = [0, 64], sizes = [2, 32], strides = [1, 1]} : vector<2x96xf32> to vector<2x32xf32>
    %187 = arith.mulf %174, %186 : vector<2x32xf32>
    %188 = arith.addf %185, %187 : vector<2x32xf32>
    %189 = math.tanh %188 : vector<2x32xf32>
    %cst_59 = arith.constant 1.000000e+00 : f32
    %190 = vector.broadcast %cst_59 : f32 to vector<2x32xf32>
    %191 = arith.subf %190, %184 : vector<2x32xf32>
    %192 = arith.mulf %191, %189 : vector<2x32xf32>
    %193 = arith.mulf %184, %160 : vector<2x32xf32>
    %194 = arith.addf %192, %193 : vector<2x32xf32>
    %c8 = arith.constant 8 : index
    %c0_60 = arith.constant 0 : index
    %195 = vector.load %arg8[%c8, %c0_60] : memref<16x32xf32, #tpu.memory_space<vmem>>, vector<2x32xf32>
    tpu.vector_store %arg8[%c8, %c0_60], %194 {strides = array<i32>} : memref<16x32xf32, #tpu.memory_space<vmem>>, vector<2x32xf32>,
    %196 = vector.extract_strided_slice %11 {offsets = [10, 0], sizes = [2, 96], strides = [1, 1]} : vector<16x96xf32> to vector<2x96xf32>
    %cst_61 = arith.constant dense<0.000000e+00> : vector<2x96xf32>
    %197 = tpu.matmul %194, %20, %cst_61 {dimension_numbers = #tpu.dot_dimension_numbers<[1], [0], [0], [1], [0, 0, 1, 1], [], []>} : vector<2x32xf32>, vector<32x96xf32>, vector<2x96xf32> -> vector<2x96xf32>
    %198 = arith.addf %197, %24 : vector<2x96xf32>
    %199 = vector.extract_strided_slice %196 {offsets = [0, 0], sizes = [2, 32], strides = [1, 1]} : vector<2x96xf32> to vector<2x32xf32>
    %200 = vector.extract_strided_slice %198 {offsets = [0, 0], sizes = [2, 32], strides = [1, 1]} : vector<2x96xf32> to vector<2x32xf32>
    %201 = arith.addf %199, %200 : vector<2x32xf32>
    %cst_62 = arith.constant 0.000000e+00 : f32
    %202 = vector.broadcast %cst_62 : f32 to vector<2x32xf32>
    %203 = arith.subf %202, %201 : vector<2x32xf32>
    %204 = math.exp %203 : vector<2x32xf32>
    %cst_63 = arith.constant 1.000000e+00 : f32
    %205 = vector.broadcast %cst_63 : f32 to vector<2x32xf32>
    %206 = arith.addf %205, %204 : vector<2x32xf32>
    %cst_64 = arith.constant 1.000000e+00 : f32
    %207 = vector.broadcast %cst_64 : f32 to vector<2x32xf32>
    %208 = arith.divf %207, %206 : vector<2x32xf32>
    %209 = vector.extract_strided_slice %196 {offsets = [0, 32], sizes = [2, 32], strides = [1, 1]} : vector<2x96xf32> to vector<2x32xf32>
    %210 = vector.extract_strided_slice %198 {offsets = [0, 32], sizes = [2, 32], strides = [1, 1]} : vector<2x96xf32> to vector<2x32xf32>
    %211 = arith.addf %209, %210 : vector<2x32xf32>
    %cst_65 = arith.constant 0.000000e+00 : f32
    %212 = vector.broadcast %cst_65 : f32 to vector<2x32xf32>
    %213 = arith.subf %212, %211 : vector<2x32xf32>
    %214 = math.exp %213 : vector<2x32xf32>
    %cst_66 = arith.constant 1.000000e+00 : f32
    %215 = vector.broadcast %cst_66 : f32 to vector<2x32xf32>
    %216 = arith.addf %215, %214 : vector<2x32xf32>
    %cst_67 = arith.constant 1.000000e+00 : f32
    %217 = vector.broadcast %cst_67 : f32 to vector<2x32xf32>
    %218 = arith.divf %217, %216 : vector<2x32xf32>
    %219 = vector.extract_strided_slice %196 {offsets = [0, 64], sizes = [2, 32], strides = [1, 1]} : vector<2x96xf32> to vector<2x32xf32>
    %220 = vector.extract_strided_slice %198 {offsets = [0, 64], sizes = [2, 32], strides = [1, 1]} : vector<2x96xf32> to vector<2x32xf32>
    %221 = arith.mulf %208, %220 : vector<2x32xf32>
    %222 = arith.addf %219, %221 : vector<2x32xf32>
    %223 = math.tanh %222 : vector<2x32xf32>
    %cst_68 = arith.constant 1.000000e+00 : f32
    %224 = vector.broadcast %cst_68 : f32 to vector<2x32xf32>
    %225 = arith.subf %224, %218 : vector<2x32xf32>
    %226 = arith.mulf %225, %223 : vector<2x32xf32>
    %227 = arith.mulf %218, %194 : vector<2x32xf32>
    %228 = arith.addf %226, %227 : vector<2x32xf32>
    %c10 = arith.constant 10 : index
    %c0_69 = arith.constant 0 : index
    %229 = vector.load %arg8[%c10, %c0_69] : memref<16x32xf32, #tpu.memory_space<vmem>>, vector<2x32xf32>
    tpu.vector_store %arg8[%c10, %c0_69], %228 {strides = array<i32>} : memref<16x32xf32, #tpu.memory_space<vmem>>, vector<2x32xf32>,
    %230 = vector.extract_strided_slice %11 {offsets = [12, 0], sizes = [2, 96], strides = [1, 1]} : vector<16x96xf32> to vector<2x96xf32>
    %cst_70 = arith.constant dense<0.000000e+00> : vector<2x96xf32>
    %231 = tpu.matmul %228, %20, %cst_70 {dimension_numbers = #tpu.dot_dimension_numbers<[1], [0], [0], [1], [0, 0, 1, 1], [], []>} : vector<2x32xf32>, vector<32x96xf32>, vector<2x96xf32> -> vector<2x96xf32>
    %232 = arith.addf %231, %24 : vector<2x96xf32>
    %233 = vector.extract_strided_slice %230 {offsets = [0, 0], sizes = [2, 32], strides = [1, 1]} : vector<2x96xf32> to vector<2x32xf32>
    %234 = vector.extract_strided_slice %232 {offsets = [0, 0], sizes = [2, 32], strides = [1, 1]} : vector<2x96xf32> to vector<2x32xf32>
    %235 = arith.addf %233, %234 : vector<2x32xf32>
    %cst_71 = arith.constant 0.000000e+00 : f32
    %236 = vector.broadcast %cst_71 : f32 to vector<2x32xf32>
    %237 = arith.subf %236, %235 : vector<2x32xf32>
    %238 = math.exp %237 : vector<2x32xf32>
    %cst_72 = arith.constant 1.000000e+00 : f32
    %239 = vector.broadcast %cst_72 : f32 to vector<2x32xf32>
    %240 = arith.addf %239, %238 : vector<2x32xf32>
    %cst_73 = arith.constant 1.000000e+00 : f32
    %241 = vector.broadcast %cst_73 : f32 to vector<2x32xf32>
    %242 = arith.divf %241, %240 : vector<2x32xf32>
    %243 = vector.extract_strided_slice %230 {offsets = [0, 32], sizes = [2, 32], strides = [1, 1]} : vector<2x96xf32> to vector<2x32xf32>
    %244 = vector.extract_strided_slice %232 {offsets = [0, 32], sizes = [2, 32], strides = [1, 1]} : vector<2x96xf32> to vector<2x32xf32>
    %245 = arith.addf %243, %244 : vector<2x32xf32>
    %cst_74 = arith.constant 0.000000e+00 : f32
    %246 = vector.broadcast %cst_74 : f32 to vector<2x32xf32>
    %247 = arith.subf %246, %245 : vector<2x32xf32>
    %248 = math.exp %247 : vector<2x32xf32>
    %cst_75 = arith.constant 1.000000e+00 : f32
    %249 = vector.broadcast %cst_75 : f32 to vector<2x32xf32>
    %250 = arith.addf %249, %248 : vector<2x32xf32>
    %cst_76 = arith.constant 1.000000e+00 : f32
    %251 = vector.broadcast %cst_76 : f32 to vector<2x32xf32>
    %252 = arith.divf %251, %250 : vector<2x32xf32>
    %253 = vector.extract_strided_slice %230 {offsets = [0, 64], sizes = [2, 32], strides = [1, 1]} : vector<2x96xf32> to vector<2x32xf32>
    %254 = vector.extract_strided_slice %232 {offsets = [0, 64], sizes = [2, 32], strides = [1, 1]} : vector<2x96xf32> to vector<2x32xf32>
    %255 = arith.mulf %242, %254 : vector<2x32xf32>
    %256 = arith.addf %253, %255 : vector<2x32xf32>
    %257 = math.tanh %256 : vector<2x32xf32>
    %cst_77 = arith.constant 1.000000e+00 : f32
    %258 = vector.broadcast %cst_77 : f32 to vector<2x32xf32>
    %259 = arith.subf %258, %252 : vector<2x32xf32>
    %260 = arith.mulf %259, %257 : vector<2x32xf32>
    %261 = arith.mulf %252, %228 : vector<2x32xf32>
    %262 = arith.addf %260, %261 : vector<2x32xf32>
    %c12 = arith.constant 12 : index
    %c0_78 = arith.constant 0 : index
    %263 = vector.load %arg8[%c12, %c0_78] : memref<16x32xf32, #tpu.memory_space<vmem>>, vector<2x32xf32>
    tpu.vector_store %arg8[%c12, %c0_78], %262 {strides = array<i32>} : memref<16x32xf32, #tpu.memory_space<vmem>>, vector<2x32xf32>,
    %264 = vector.extract_strided_slice %11 {offsets = [14, 0], sizes = [2, 96], strides = [1, 1]} : vector<16x96xf32> to vector<2x96xf32>
    %cst_79 = arith.constant dense<0.000000e+00> : vector<2x96xf32>
    %265 = tpu.matmul %262, %20, %cst_79 {dimension_numbers = #tpu.dot_dimension_numbers<[1], [0], [0], [1], [0, 0, 1, 1], [], []>} : vector<2x32xf32>, vector<32x96xf32>, vector<2x96xf32> -> vector<2x96xf32>
    %266 = arith.addf %265, %24 : vector<2x96xf32>
    %267 = vector.extract_strided_slice %264 {offsets = [0, 0], sizes = [2, 32], strides = [1, 1]} : vector<2x96xf32> to vector<2x32xf32>
    %268 = vector.extract_strided_slice %266 {offsets = [0, 0], sizes = [2, 32], strides = [1, 1]} : vector<2x96xf32> to vector<2x32xf32>
    %269 = arith.addf %267, %268 : vector<2x32xf32>
    %cst_80 = arith.constant 0.000000e+00 : f32
    %270 = vector.broadcast %cst_80 : f32 to vector<2x32xf32>
    %271 = arith.subf %270, %269 : vector<2x32xf32>
    %272 = math.exp %271 : vector<2x32xf32>
    %cst_81 = arith.constant 1.000000e+00 : f32
    %273 = vector.broadcast %cst_81 : f32 to vector<2x32xf32>
    %274 = arith.addf %273, %272 : vector<2x32xf32>
    %cst_82 = arith.constant 1.000000e+00 : f32
    %275 = vector.broadcast %cst_82 : f32 to vector<2x32xf32>
    %276 = arith.divf %275, %274 : vector<2x32xf32>
    %277 = vector.extract_strided_slice %264 {offsets = [0, 32], sizes = [2, 32], strides = [1, 1]} : vector<2x96xf32> to vector<2x32xf32>
    %278 = vector.extract_strided_slice %266 {offsets = [0, 32], sizes = [2, 32], strides = [1, 1]} : vector<2x96xf32> to vector<2x32xf32>
    %279 = arith.addf %277, %278 : vector<2x32xf32>
    %cst_83 = arith.constant 0.000000e+00 : f32
    %280 = vector.broadcast %cst_83 : f32 to vector<2x32xf32>
    %281 = arith.subf %280, %279 : vector<2x32xf32>
    %282 = math.exp %281 : vector<2x32xf32>
    %cst_84 = arith.constant 1.000000e+00 : f32
    %283 = vector.broadcast %cst_84 : f32 to vector<2x32xf32>
    %284 = arith.addf %283, %282 : vector<2x32xf32>
    %cst_85 = arith.constant 1.000000e+00 : f32
    %285 = vector.broadcast %cst_85 : f32 to vector<2x32xf32>
    %286 = arith.divf %285, %284 : vector<2x32xf32>
    %287 = vector.extract_strided_slice %264 {offsets = [0, 64], sizes = [2, 32], strides = [1, 1]} : vector<2x96xf32> to vector<2x32xf32>
    %288 = vector.extract_strided_slice %266 {offsets = [0, 64], sizes = [2, 32], strides = [1, 1]} : vector<2x96xf32> to vector<2x32xf32>
    %289 = arith.mulf %276, %288 : vector<2x32xf32>
    %290 = arith.addf %287, %289 : vector<2x32xf32>
    %291 = math.tanh %290 : vector<2x32xf32>
    %cst_86 = arith.constant 1.000000e+00 : f32
    %292 = vector.broadcast %cst_86 : f32 to vector<2x32xf32>
    %293 = arith.subf %292, %286 : vector<2x32xf32>
    %294 = arith.mulf %293, %291 : vector<2x32xf32>
    %295 = arith.mulf %286, %262 : vector<2x32xf32>
    %296 = arith.addf %294, %295 : vector<2x32xf32>
    %c14 = arith.constant 14 : index
    %c0_87 = arith.constant 0 : index
    %297 = vector.load %arg8[%c14, %c0_87] : memref<16x32xf32, #tpu.memory_space<vmem>>, vector<2x32xf32>
    tpu.vector_store %arg8[%c14, %c0_87], %296 {strides = array<i32>} : memref<16x32xf32, #tpu.memory_space<vmem>>, vector<2x32xf32>,
    %298 = vector.extract_strided_slice %2 {offsets = [1, 0, 0], sizes = [1, 32, 96], strides = [1, 1, 1]} : vector<2x32x96xf32> to vector<1x32x96xf32>
    %299 = vector.shape_cast %298 : vector<1x32x96xf32> to vector<32x96xf32>
    %300 = vector.extract_strided_slice %4 {offsets = [1, 0, 0], sizes = [1, 1, 96], strides = [1, 1, 1]} : vector<2x1x96xf32> to vector<1x1x96xf32>
    %301 = vector.shape_cast %300 : vector<1x1x96xf32> to vector<1x96xf32>
    %302 = vector.shape_cast %301 : vector<1x96xf32> to vector<1x96xf32>
    %303 = vector.broadcast %302 : vector<1x96xf32> to vector<2x96xf32>
    %cst_88 = arith.constant 0.000000e+00 : f32
    %304 = vector.broadcast %cst_88 : f32 to vector<2x32xf32>
    %305 = vector.extract_strided_slice %18 {offsets = [14, 0], sizes = [2, 96], strides = [1, 1]} : vector<16x96xf32> to vector<2x96xf32>
    %cst_89 = arith.constant dense<0.000000e+00> : vector<2x96xf32>
    %306 = tpu.matmul %304, %299, %cst_89 {dimension_numbers = #tpu.dot_dimension_numbers<[1], [0], [0], [1], [0, 0, 1, 1], [], []>} : vector<2x32xf32>, vector<32x96xf32>, vector<2x96xf32> -> vector<2x96xf32>
    %307 = arith.addf %306, %303 : vector<2x96xf32>
    %308 = vector.extract_strided_slice %305 {offsets = [0, 0], sizes = [2, 32], strides = [1, 1]} : vector<2x96xf32> to vector<2x32xf32>
    %309 = vector.extract_strided_slice %307 {offsets = [0, 0], sizes = [2, 32], strides = [1, 1]} : vector<2x96xf32> to vector<2x32xf32>
    %310 = arith.addf %308, %309 : vector<2x32xf32>
    %cst_90 = arith.constant 0.000000e+00 : f32
    %311 = vector.broadcast %cst_90 : f32 to vector<2x32xf32>
    %312 = arith.subf %311, %310 : vector<2x32xf32>
    %313 = math.exp %312 : vector<2x32xf32>
    %cst_91 = arith.constant 1.000000e+00 : f32
    %314 = vector.broadcast %cst_91 : f32 to vector<2x32xf32>
    %315 = arith.addf %314, %313 : vector<2x32xf32>
    %cst_92 = arith.constant 1.000000e+00 : f32
    %316 = vector.broadcast %cst_92 : f32 to vector<2x32xf32>
    %317 = arith.divf %316, %315 : vector<2x32xf32>
    %318 = vector.extract_strided_slice %305 {offsets = [0, 32], sizes = [2, 32], strides = [1, 1]} : vector<2x96xf32> to vector<2x32xf32>
    %319 = vector.extract_strided_slice %307 {offsets = [0, 32], sizes = [2, 32], strides = [1, 1]} : vector<2x96xf32> to vector<2x32xf32>
    %320 = arith.addf %318, %319 : vector<2x32xf32>
    %cst_93 = arith.constant 0.000000e+00 : f32
    %321 = vector.broadcast %cst_93 : f32 to vector<2x32xf32>
    %322 = arith.subf %321, %320 : vector<2x32xf32>
    %323 = math.exp %322 : vector<2x32xf32>
    %cst_94 = arith.constant 1.000000e+00 : f32
    %324 = vector.broadcast %cst_94 : f32 to vector<2x32xf32>
    %325 = arith.addf %324, %323 : vector<2x32xf32>
    %cst_95 = arith.constant 1.000000e+00 : f32
    %326 = vector.broadcast %cst_95 : f32 to vector<2x32xf32>
    %327 = arith.divf %326, %325 : vector<2x32xf32>
    %328 = vector.extract_strided_slice %305 {offsets = [0, 64], sizes = [2, 32], strides = [1, 1]} : vector<2x96xf32> to vector<2x32xf32>
    %329 = vector.extract_strided_slice %307 {offsets = [0, 64], sizes = [2, 32], strides = [1, 1]} : vector<2x96xf32> to vector<2x32xf32>
    %330 = arith.mulf %317, %329 : vector<2x32xf32>
    %331 = arith.addf %328, %330 : vector<2x32xf32>
    %332 = math.tanh %331 : vector<2x32xf32>
    %cst_96 = arith.constant 1.000000e+00 : f32
    %333 = vector.broadcast %cst_96 : f32 to vector<2x32xf32>
    %334 = arith.subf %333, %327 : vector<2x32xf32>
    %335 = arith.mulf %334, %332 : vector<2x32xf32>
    %336 = arith.mulf %327, %304 : vector<2x32xf32>
    %337 = arith.addf %335, %336 : vector<2x32xf32>
    %c14_97 = arith.constant 14 : index
    %c0_98 = arith.constant 0 : index
    %338 = vector.load %arg9[%c14_97, %c0_98] : memref<16x32xf32, #tpu.memory_space<vmem>>, vector<2x32xf32>
    tpu.vector_store %arg9[%c14_97, %c0_98], %337 {strides = array<i32>} : memref<16x32xf32, #tpu.memory_space<vmem>>, vector<2x32xf32>,
    %339 = vector.extract_strided_slice %18 {offsets = [12, 0], sizes = [2, 96], strides = [1, 1]} : vector<16x96xf32> to vector<2x96xf32>
    %cst_99 = arith.constant dense<0.000000e+00> : vector<2x96xf32>
    %340 = tpu.matmul %337, %299, %cst_99 {dimension_numbers = #tpu.dot_dimension_numbers<[1], [0], [0], [1], [0, 0, 1, 1], [], []>} : vector<2x32xf32>, vector<32x96xf32>, vector<2x96xf32> -> vector<2x96xf32>
    %341 = arith.addf %340, %303 : vector<2x96xf32>
    %342 = vector.extract_strided_slice %339 {offsets = [0, 0], sizes = [2, 32], strides = [1, 1]} : vector<2x96xf32> to vector<2x32xf32>
    %343 = vector.extract_strided_slice %341 {offsets = [0, 0], sizes = [2, 32], strides = [1, 1]} : vector<2x96xf32> to vector<2x32xf32>
    %344 = arith.addf %342, %343 : vector<2x32xf32>
    %cst_100 = arith.constant 0.000000e+00 : f32
    %345 = vector.broadcast %cst_100 : f32 to vector<2x32xf32>
    %346 = arith.subf %345, %344 : vector<2x32xf32>
    %347 = math.exp %346 : vector<2x32xf32>
    %cst_101 = arith.constant 1.000000e+00 : f32
    %348 = vector.broadcast %cst_101 : f32 to vector<2x32xf32>
    %349 = arith.addf %348, %347 : vector<2x32xf32>
    %cst_102 = arith.constant 1.000000e+00 : f32
    %350 = vector.broadcast %cst_102 : f32 to vector<2x32xf32>
    %351 = arith.divf %350, %349 : vector<2x32xf32>
    %352 = vector.extract_strided_slice %339 {offsets = [0, 32], sizes = [2, 32], strides = [1, 1]} : vector<2x96xf32> to vector<2x32xf32>
    %353 = vector.extract_strided_slice %341 {offsets = [0, 32], sizes = [2, 32], strides = [1, 1]} : vector<2x96xf32> to vector<2x32xf32>
    %354 = arith.addf %352, %353 : vector<2x32xf32>
    %cst_103 = arith.constant 0.000000e+00 : f32
    %355 = vector.broadcast %cst_103 : f32 to vector<2x32xf32>
    %356 = arith.subf %355, %354 : vector<2x32xf32>
    %357 = math.exp %356 : vector<2x32xf32>
    %cst_104 = arith.constant 1.000000e+00 : f32
    %358 = vector.broadcast %cst_104 : f32 to vector<2x32xf32>
    %359 = arith.addf %358, %357 : vector<2x32xf32>
    %cst_105 = arith.constant 1.000000e+00 : f32
    %360 = vector.broadcast %cst_105 : f32 to vector<2x32xf32>
    %361 = arith.divf %360, %359 : vector<2x32xf32>
    %362 = vector.extract_strided_slice %339 {offsets = [0, 64], sizes = [2, 32], strides = [1, 1]} : vector<2x96xf32> to vector<2x32xf32>
    %363 = vector.extract_strided_slice %341 {offsets = [0, 64], sizes = [2, 32], strides = [1, 1]} : vector<2x96xf32> to vector<2x32xf32>
    %364 = arith.mulf %351, %363 : vector<2x32xf32>
    %365 = arith.addf %362, %364 : vector<2x32xf32>
    %366 = math.tanh %365 : vector<2x32xf32>
    %cst_106 = arith.constant 1.000000e+00 : f32
    %367 = vector.broadcast %cst_106 : f32 to vector<2x32xf32>
    %368 = arith.subf %367, %361 : vector<2x32xf32>
    %369 = arith.mulf %368, %366 : vector<2x32xf32>
    %370 = arith.mulf %361, %337 : vector<2x32xf32>
    %371 = arith.addf %369, %370 : vector<2x32xf32>
    %c12_107 = arith.constant 12 : index
    %c0_108 = arith.constant 0 : index
    %372 = vector.load %arg9[%c12_107, %c0_108] : memref<16x32xf32, #tpu.memory_space<vmem>>, vector<2x32xf32>
    tpu.vector_store %arg9[%c12_107, %c0_108], %371 {strides = array<i32>} : memref<16x32xf32, #tpu.memory_space<vmem>>, vector<2x32xf32>,
    %373 = vector.extract_strided_slice %18 {offsets = [10, 0], sizes = [2, 96], strides = [1, 1]} : vector<16x96xf32> to vector<2x96xf32>
    %cst_109 = arith.constant dense<0.000000e+00> : vector<2x96xf32>
    %374 = tpu.matmul %371, %299, %cst_109 {dimension_numbers = #tpu.dot_dimension_numbers<[1], [0], [0], [1], [0, 0, 1, 1], [], []>} : vector<2x32xf32>, vector<32x96xf32>, vector<2x96xf32> -> vector<2x96xf32>
    %375 = arith.addf %374, %303 : vector<2x96xf32>
    %376 = vector.extract_strided_slice %373 {offsets = [0, 0], sizes = [2, 32], strides = [1, 1]} : vector<2x96xf32> to vector<2x32xf32>
    %377 = vector.extract_strided_slice %375 {offsets = [0, 0], sizes = [2, 32], strides = [1, 1]} : vector<2x96xf32> to vector<2x32xf32>
    %378 = arith.addf %376, %377 : vector<2x32xf32>
    %cst_110 = arith.constant 0.000000e+00 : f32
    %379 = vector.broadcast %cst_110 : f32 to vector<2x32xf32>
    %380 = arith.subf %379, %378 : vector<2x32xf32>
    %381 = math.exp %380 : vector<2x32xf32>
    %cst_111 = arith.constant 1.000000e+00 : f32
    %382 = vector.broadcast %cst_111 : f32 to vector<2x32xf32>
    %383 = arith.addf %382, %381 : vector<2x32xf32>
    %cst_112 = arith.constant 1.000000e+00 : f32
    %384 = vector.broadcast %cst_112 : f32 to vector<2x32xf32>
    %385 = arith.divf %384, %383 : vector<2x32xf32>
    %386 = vector.extract_strided_slice %373 {offsets = [0, 32], sizes = [2, 32], strides = [1, 1]} : vector<2x96xf32> to vector<2x32xf32>
    %387 = vector.extract_strided_slice %375 {offsets = [0, 32], sizes = [2, 32], strides = [1, 1]} : vector<2x96xf32> to vector<2x32xf32>
    %388 = arith.addf %386, %387 : vector<2x32xf32>
    %cst_113 = arith.constant 0.000000e+00 : f32
    %389 = vector.broadcast %cst_113 : f32 to vector<2x32xf32>
    %390 = arith.subf %389, %388 : vector<2x32xf32>
    %391 = math.exp %390 : vector<2x32xf32>
    %cst_114 = arith.constant 1.000000e+00 : f32
    %392 = vector.broadcast %cst_114 : f32 to vector<2x32xf32>
    %393 = arith.addf %392, %391 : vector<2x32xf32>
    %cst_115 = arith.constant 1.000000e+00 : f32
    %394 = vector.broadcast %cst_115 : f32 to vector<2x32xf32>
    %395 = arith.divf %394, %393 : vector<2x32xf32>
    %396 = vector.extract_strided_slice %373 {offsets = [0, 64], sizes = [2, 32], strides = [1, 1]} : vector<2x96xf32> to vector<2x32xf32>
    %397 = vector.extract_strided_slice %375 {offsets = [0, 64], sizes = [2, 32], strides = [1, 1]} : vector<2x96xf32> to vector<2x32xf32>
    %398 = arith.mulf %385, %397 : vector<2x32xf32>
    %399 = arith.addf %396, %398 : vector<2x32xf32>
    %400 = math.tanh %399 : vector<2x32xf32>
    %cst_116 = arith.constant 1.000000e+00 : f32
    %401 = vector.broadcast %cst_116 : f32 to vector<2x32xf32>
    %402 = arith.subf %401, %395 : vector<2x32xf32>
    %403 = arith.mulf %402, %400 : vector<2x32xf32>
    %404 = arith.mulf %395, %371 : vector<2x32xf32>
    %405 = arith.addf %403, %404 : vector<2x32xf32>
    %c10_117 = arith.constant 10 : index
    %c0_118 = arith.constant 0 : index
    %406 = vector.load %arg9[%c10_117, %c0_118] : memref<16x32xf32, #tpu.memory_space<vmem>>, vector<2x32xf32>
    tpu.vector_store %arg9[%c10_117, %c0_118], %405 {strides = array<i32>} : memref<16x32xf32, #tpu.memory_space<vmem>>, vector<2x32xf32>,
    %407 = vector.extract_strided_slice %18 {offsets = [8, 0], sizes = [2, 96], strides = [1, 1]} : vector<16x96xf32> to vector<2x96xf32>
    %cst_119 = arith.constant dense<0.000000e+00> : vector<2x96xf32>
    %408 = tpu.matmul %405, %299, %cst_119 {dimension_numbers = #tpu.dot_dimension_numbers<[1], [0], [0], [1], [0, 0, 1, 1], [], []>} : vector<2x32xf32>, vector<32x96xf32>, vector<2x96xf32> -> vector<2x96xf32>
    %409 = arith.addf %408, %303 : vector<2x96xf32>
    %410 = vector.extract_strided_slice %407 {offsets = [0, 0], sizes = [2, 32], strides = [1, 1]} : vector<2x96xf32> to vector<2x32xf32>
    %411 = vector.extract_strided_slice %409 {offsets = [0, 0], sizes = [2, 32], strides = [1, 1]} : vector<2x96xf32> to vector<2x32xf32>
    %412 = arith.addf %410, %411 : vector<2x32xf32>
    %cst_120 = arith.constant 0.000000e+00 : f32
    %413 = vector.broadcast %cst_120 : f32 to vector<2x32xf32>
    %414 = arith.subf %413, %412 : vector<2x32xf32>
    %415 = math.exp %414 : vector<2x32xf32>
    %cst_121 = arith.constant 1.000000e+00 : f32
    %416 = vector.broadcast %cst_121 : f32 to vector<2x32xf32>
    %417 = arith.addf %416, %415 : vector<2x32xf32>
    %cst_122 = arith.constant 1.000000e+00 : f32
    %418 = vector.broadcast %cst_122 : f32 to vector<2x32xf32>
    %419 = arith.divf %418, %417 : vector<2x32xf32>
    %420 = vector.extract_strided_slice %407 {offsets = [0, 32], sizes = [2, 32], strides = [1, 1]} : vector<2x96xf32> to vector<2x32xf32>
    %421 = vector.extract_strided_slice %409 {offsets = [0, 32], sizes = [2, 32], strides = [1, 1]} : vector<2x96xf32> to vector<2x32xf32>
    %422 = arith.addf %420, %421 : vector<2x32xf32>
    %cst_123 = arith.constant 0.000000e+00 : f32
    %423 = vector.broadcast %cst_123 : f32 to vector<2x32xf32>
    %424 = arith.subf %423, %422 : vector<2x32xf32>
    %425 = math.exp %424 : vector<2x32xf32>
    %cst_124 = arith.constant 1.000000e+00 : f32
    %426 = vector.broadcast %cst_124 : f32 to vector<2x32xf32>
    %427 = arith.addf %426, %425 : vector<2x32xf32>
    %cst_125 = arith.constant 1.000000e+00 : f32
    %428 = vector.broadcast %cst_125 : f32 to vector<2x32xf32>
    %429 = arith.divf %428, %427 : vector<2x32xf32>
    %430 = vector.extract_strided_slice %407 {offsets = [0, 64], sizes = [2, 32], strides = [1, 1]} : vector<2x96xf32> to vector<2x32xf32>
    %431 = vector.extract_strided_slice %409 {offsets = [0, 64], sizes = [2, 32], strides = [1, 1]} : vector<2x96xf32> to vector<2x32xf32>
    %432 = arith.mulf %419, %431 : vector<2x32xf32>
    %433 = arith.addf %430, %432 : vector<2x32xf32>
    %434 = math.tanh %433 : vector<2x32xf32>
    %cst_126 = arith.constant 1.000000e+00 : f32
    %435 = vector.broadcast %cst_126 : f32 to vector<2x32xf32>
    %436 = arith.subf %435, %429 : vector<2x32xf32>
    %437 = arith.mulf %436, %434 : vector<2x32xf32>
    %438 = arith.mulf %429, %405 : vector<2x32xf32>
    %439 = arith.addf %437, %438 : vector<2x32xf32>
    %c8_127 = arith.constant 8 : index
    %c0_128 = arith.constant 0 : index
    %440 = vector.load %arg9[%c8_127, %c0_128] : memref<16x32xf32, #tpu.memory_space<vmem>>, vector<2x32xf32>
    tpu.vector_store %arg9[%c8_127, %c0_128], %439 {strides = array<i32>} : memref<16x32xf32, #tpu.memory_space<vmem>>, vector<2x32xf32>,
    %441 = vector.extract_strided_slice %18 {offsets = [6, 0], sizes = [2, 96], strides = [1, 1]} : vector<16x96xf32> to vector<2x96xf32>
    %cst_129 = arith.constant dense<0.000000e+00> : vector<2x96xf32>
    %442 = tpu.matmul %439, %299, %cst_129 {dimension_numbers = #tpu.dot_dimension_numbers<[1], [0], [0], [1], [0, 0, 1, 1], [], []>} : vector<2x32xf32>, vector<32x96xf32>, vector<2x96xf32> -> vector<2x96xf32>
    %443 = arith.addf %442, %303 : vector<2x96xf32>
    %444 = vector.extract_strided_slice %441 {offsets = [0, 0], sizes = [2, 32], strides = [1, 1]} : vector<2x96xf32> to vector<2x32xf32>
    %445 = vector.extract_strided_slice %443 {offsets = [0, 0], sizes = [2, 32], strides = [1, 1]} : vector<2x96xf32> to vector<2x32xf32>
    %446 = arith.addf %444, %445 : vector<2x32xf32>
    %cst_130 = arith.constant 0.000000e+00 : f32
    %447 = vector.broadcast %cst_130 : f32 to vector<2x32xf32>
    %448 = arith.subf %447, %446 : vector<2x32xf32>
    %449 = math.exp %448 : vector<2x32xf32>
    %cst_131 = arith.constant 1.000000e+00 : f32
    %450 = vector.broadcast %cst_131 : f32 to vector<2x32xf32>
    %451 = arith.addf %450, %449 : vector<2x32xf32>
    %cst_132 = arith.constant 1.000000e+00 : f32
    %452 = vector.broadcast %cst_132 : f32 to vector<2x32xf32>
    %453 = arith.divf %452, %451 : vector<2x32xf32>
    %454 = vector.extract_strided_slice %441 {offsets = [0, 32], sizes = [2, 32], strides = [1, 1]} : vector<2x96xf32> to vector<2x32xf32>
    %455 = vector.extract_strided_slice %443 {offsets = [0, 32], sizes = [2, 32], strides = [1, 1]} : vector<2x96xf32> to vector<2x32xf32>
    %456 = arith.addf %454, %455 : vector<2x32xf32>
    %cst_133 = arith.constant 0.000000e+00 : f32
    %457 = vector.broadcast %cst_133 : f32 to vector<2x32xf32>
    %458 = arith.subf %457, %456 : vector<2x32xf32>
    %459 = math.exp %458 : vector<2x32xf32>
    %cst_134 = arith.constant 1.000000e+00 : f32
    %460 = vector.broadcast %cst_134 : f32 to vector<2x32xf32>
    %461 = arith.addf %460, %459 : vector<2x32xf32>
    %cst_135 = arith.constant 1.000000e+00 : f32
    %462 = vector.broadcast %cst_135 : f32 to vector<2x32xf32>
    %463 = arith.divf %462, %461 : vector<2x32xf32>
    %464 = vector.extract_strided_slice %441 {offsets = [0, 64], sizes = [2, 32], strides = [1, 1]} : vector<2x96xf32> to vector<2x32xf32>
    %465 = vector.extract_strided_slice %443 {offsets = [0, 64], sizes = [2, 32], strides = [1, 1]} : vector<2x96xf32> to vector<2x32xf32>
    %466 = arith.mulf %453, %465 : vector<2x32xf32>
    %467 = arith.addf %464, %466 : vector<2x32xf32>
    %468 = math.tanh %467 : vector<2x32xf32>
    %cst_136 = arith.constant 1.000000e+00 : f32
    %469 = vector.broadcast %cst_136 : f32 to vector<2x32xf32>
    %470 = arith.subf %469, %463 : vector<2x32xf32>
    %471 = arith.mulf %470, %468 : vector<2x32xf32>
    %472 = arith.mulf %463, %439 : vector<2x32xf32>
    %473 = arith.addf %471, %472 : vector<2x32xf32>
    %c6_137 = arith.constant 6 : index
    %c0_138 = arith.constant 0 : index
    %474 = vector.load %arg9[%c6_137, %c0_138] : memref<16x32xf32, #tpu.memory_space<vmem>>, vector<2x32xf32>
    tpu.vector_store %arg9[%c6_137, %c0_138], %473 {strides = array<i32>} : memref<16x32xf32, #tpu.memory_space<vmem>>, vector<2x32xf32>,
    %475 = vector.extract_strided_slice %18 {offsets = [4, 0], sizes = [2, 96], strides = [1, 1]} : vector<16x96xf32> to vector<2x96xf32>
    %cst_139 = arith.constant dense<0.000000e+00> : vector<2x96xf32>
    %476 = tpu.matmul %473, %299, %cst_139 {dimension_numbers = #tpu.dot_dimension_numbers<[1], [0], [0], [1], [0, 0, 1, 1], [], []>} : vector<2x32xf32>, vector<32x96xf32>, vector<2x96xf32> -> vector<2x96xf32>
    %477 = arith.addf %476, %303 : vector<2x96xf32>
    %478 = vector.extract_strided_slice %475 {offsets = [0, 0], sizes = [2, 32], strides = [1, 1]} : vector<2x96xf32> to vector<2x32xf32>
    %479 = vector.extract_strided_slice %477 {offsets = [0, 0], sizes = [2, 32], strides = [1, 1]} : vector<2x96xf32> to vector<2x32xf32>
    %480 = arith.addf %478, %479 : vector<2x32xf32>
    %cst_140 = arith.constant 0.000000e+00 : f32
    %481 = vector.broadcast %cst_140 : f32 to vector<2x32xf32>
    %482 = arith.subf %481, %480 : vector<2x32xf32>
    %483 = math.exp %482 : vector<2x32xf32>
    %cst_141 = arith.constant 1.000000e+00 : f32
    %484 = vector.broadcast %cst_141 : f32 to vector<2x32xf32>
    %485 = arith.addf %484, %483 : vector<2x32xf32>
    %cst_142 = arith.constant 1.000000e+00 : f32
    %486 = vector.broadcast %cst_142 : f32 to vector<2x32xf32>
    %487 = arith.divf %486, %485 : vector<2x32xf32>
    %488 = vector.extract_strided_slice %475 {offsets = [0, 32], sizes = [2, 32], strides = [1, 1]} : vector<2x96xf32> to vector<2x32xf32>
    %489 = vector.extract_strided_slice %477 {offsets = [0, 32], sizes = [2, 32], strides = [1, 1]} : vector<2x96xf32> to vector<2x32xf32>
    %490 = arith.addf %488, %489 : vector<2x32xf32>
    %cst_143 = arith.constant 0.000000e+00 : f32
    %491 = vector.broadcast %cst_143 : f32 to vector<2x32xf32>
    %492 = arith.subf %491, %490 : vector<2x32xf32>
    %493 = math.exp %492 : vector<2x32xf32>
    %cst_144 = arith.constant 1.000000e+00 : f32
    %494 = vector.broadcast %cst_144 : f32 to vector<2x32xf32>
    %495 = arith.addf %494, %493 : vector<2x32xf32>
    %cst_145 = arith.constant 1.000000e+00 : f32
    %496 = vector.broadcast %cst_145 : f32 to vector<2x32xf32>
    %497 = arith.divf %496, %495 : vector<2x32xf32>
    %498 = vector.extract_strided_slice %475 {offsets = [0, 64], sizes = [2, 32], strides = [1, 1]} : vector<2x96xf32> to vector<2x32xf32>
    %499 = vector.extract_strided_slice %477 {offsets = [0, 64], sizes = [2, 32], strides = [1, 1]} : vector<2x96xf32> to vector<2x32xf32>
    %500 = arith.mulf %487, %499 : vector<2x32xf32>
    %501 = arith.addf %498, %500 : vector<2x32xf32>
    %502 = math.tanh %501 : vector<2x32xf32>
    %cst_146 = arith.constant 1.000000e+00 : f32
    %503 = vector.broadcast %cst_146 : f32 to vector<2x32xf32>
    %504 = arith.subf %503, %497 : vector<2x32xf32>
    %505 = arith.mulf %504, %502 : vector<2x32xf32>
    %506 = arith.mulf %497, %473 : vector<2x32xf32>
    %507 = arith.addf %505, %506 : vector<2x32xf32>
    %c4_147 = arith.constant 4 : index
    %c0_148 = arith.constant 0 : index
    %508 = vector.load %arg9[%c4_147, %c0_148] : memref<16x32xf32, #tpu.memory_space<vmem>>, vector<2x32xf32>
    tpu.vector_store %arg9[%c4_147, %c0_148], %507 {strides = array<i32>} : memref<16x32xf32, #tpu.memory_space<vmem>>, vector<2x32xf32>,
    %509 = vector.extract_strided_slice %18 {offsets = [2, 0], sizes = [2, 96], strides = [1, 1]} : vector<16x96xf32> to vector<2x96xf32>
    %cst_149 = arith.constant dense<0.000000e+00> : vector<2x96xf32>
    %510 = tpu.matmul %507, %299, %cst_149 {dimension_numbers = #tpu.dot_dimension_numbers<[1], [0], [0], [1], [0, 0, 1, 1], [], []>} : vector<2x32xf32>, vector<32x96xf32>, vector<2x96xf32> -> vector<2x96xf32>
    %511 = arith.addf %510, %303 : vector<2x96xf32>
    %512 = vector.extract_strided_slice %509 {offsets = [0, 0], sizes = [2, 32], strides = [1, 1]} : vector<2x96xf32> to vector<2x32xf32>
    %513 = vector.extract_strided_slice %511 {offsets = [0, 0], sizes = [2, 32], strides = [1, 1]} : vector<2x96xf32> to vector<2x32xf32>
    %514 = arith.addf %512, %513 : vector<2x32xf32>
    %cst_150 = arith.constant 0.000000e+00 : f32
    %515 = vector.broadcast %cst_150 : f32 to vector<2x32xf32>
    %516 = arith.subf %515, %514 : vector<2x32xf32>
    %517 = math.exp %516 : vector<2x32xf32>
    %cst_151 = arith.constant 1.000000e+00 : f32
    %518 = vector.broadcast %cst_151 : f32 to vector<2x32xf32>
    %519 = arith.addf %518, %517 : vector<2x32xf32>
    %cst_152 = arith.constant 1.000000e+00 : f32
    %520 = vector.broadcast %cst_152 : f32 to vector<2x32xf32>
    %521 = arith.divf %520, %519 : vector<2x32xf32>
    %522 = vector.extract_strided_slice %509 {offsets = [0, 32], sizes = [2, 32], strides = [1, 1]} : vector<2x96xf32> to vector<2x32xf32>
    %523 = vector.extract_strided_slice %511 {offsets = [0, 32], sizes = [2, 32], strides = [1, 1]} : vector<2x96xf32> to vector<2x32xf32>
    %524 = arith.addf %522, %523 : vector<2x32xf32>
    %cst_153 = arith.constant 0.000000e+00 : f32
    %525 = vector.broadcast %cst_153 : f32 to vector<2x32xf32>
    %526 = arith.subf %525, %524 : vector<2x32xf32>
    %527 = math.exp %526 : vector<2x32xf32>
    %cst_154 = arith.constant 1.000000e+00 : f32
    %528 = vector.broadcast %cst_154 : f32 to vector<2x32xf32>
    %529 = arith.addf %528, %527 : vector<2x32xf32>
    %cst_155 = arith.constant 1.000000e+00 : f32
    %530 = vector.broadcast %cst_155 : f32 to vector<2x32xf32>
    %531 = arith.divf %530, %529 : vector<2x32xf32>
    %532 = vector.extract_strided_slice %509 {offsets = [0, 64], sizes = [2, 32], strides = [1, 1]} : vector<2x96xf32> to vector<2x32xf32>
    %533 = vector.extract_strided_slice %511 {offsets = [0, 64], sizes = [2, 32], strides = [1, 1]} : vector<2x96xf32> to vector<2x32xf32>
    %534 = arith.mulf %521, %533 : vector<2x32xf32>
    %535 = arith.addf %532, %534 : vector<2x32xf32>
    %536 = math.tanh %535 : vector<2x32xf32>
    %cst_156 = arith.constant 1.000000e+00 : f32
    %537 = vector.broadcast %cst_156 : f32 to vector<2x32xf32>
    %538 = arith.subf %537, %531 : vector<2x32xf32>
    %539 = arith.mulf %538, %536 : vector<2x32xf32>
    %540 = arith.mulf %531, %507 : vector<2x32xf32>
    %541 = arith.addf %539, %540 : vector<2x32xf32>
    %c2_157 = arith.constant 2 : index
    %c0_158 = arith.constant 0 : index
    %542 = vector.load %arg9[%c2_157, %c0_158] : memref<16x32xf32, #tpu.memory_space<vmem>>, vector<2x32xf32>
    tpu.vector_store %arg9[%c2_157, %c0_158], %541 {strides = array<i32>} : memref<16x32xf32, #tpu.memory_space<vmem>>, vector<2x32xf32>,
    %543 = vector.extract_strided_slice %18 {offsets = [0, 0], sizes = [2, 96], strides = [1, 1]} : vector<16x96xf32> to vector<2x96xf32>
    %cst_159 = arith.constant dense<0.000000e+00> : vector<2x96xf32>
    %544 = tpu.matmul %541, %299, %cst_159 {dimension_numbers = #tpu.dot_dimension_numbers<[1], [0], [0], [1], [0, 0, 1, 1], [], []>} : vector<2x32xf32>, vector<32x96xf32>, vector<2x96xf32> -> vector<2x96xf32>
    %545 = arith.addf %544, %303 : vector<2x96xf32>
    %546 = vector.extract_strided_slice %543 {offsets = [0, 0], sizes = [2, 32], strides = [1, 1]} : vector<2x96xf32> to vector<2x32xf32>
    %547 = vector.extract_strided_slice %545 {offsets = [0, 0], sizes = [2, 32], strides = [1, 1]} : vector<2x96xf32> to vector<2x32xf32>
    %548 = arith.addf %546, %547 : vector<2x32xf32>
    %cst_160 = arith.constant 0.000000e+00 : f32
    %549 = vector.broadcast %cst_160 : f32 to vector<2x32xf32>
    %550 = arith.subf %549, %548 : vector<2x32xf32>
    %551 = math.exp %550 : vector<2x32xf32>
    %cst_161 = arith.constant 1.000000e+00 : f32
    %552 = vector.broadcast %cst_161 : f32 to vector<2x32xf32>
    %553 = arith.addf %552, %551 : vector<2x32xf32>
    %cst_162 = arith.constant 1.000000e+00 : f32
    %554 = vector.broadcast %cst_162 : f32 to vector<2x32xf32>
    %555 = arith.divf %554, %553 : vector<2x32xf32>
    %556 = vector.extract_strided_slice %543 {offsets = [0, 32], sizes = [2, 32], strides = [1, 1]} : vector<2x96xf32> to vector<2x32xf32>
    %557 = vector.extract_strided_slice %545 {offsets = [0, 32], sizes = [2, 32], strides = [1, 1]} : vector<2x96xf32> to vector<2x32xf32>
    %558 = arith.addf %556, %557 : vector<2x32xf32>
    %cst_163 = arith.constant 0.000000e+00 : f32
    %559 = vector.broadcast %cst_163 : f32 to vector<2x32xf32>
    %560 = arith.subf %559, %558 : vector<2x32xf32>
    %561 = math.exp %560 : vector<2x32xf32>
    %cst_164 = arith.constant 1.000000e+00 : f32
    %562 = vector.broadcast %cst_164 : f32 to vector<2x32xf32>
    %563 = arith.addf %562, %561 : vector<2x32xf32>
    %cst_165 = arith.constant 1.000000e+00 : f32
    %564 = vector.broadcast %cst_165 : f32 to vector<2x32xf32>
    %565 = arith.divf %564, %563 : vector<2x32xf32>
    %566 = vector.extract_strided_slice %543 {offsets = [0, 64], sizes = [2, 32], strides = [1, 1]} : vector<2x96xf32> to vector<2x32xf32>
    %567 = vector.extract_strided_slice %545 {offsets = [0, 64], sizes = [2, 32], strides = [1, 1]} : vector<2x96xf32> to vector<2x32xf32>
    %568 = arith.mulf %555, %567 : vector<2x32xf32>
    %569 = arith.addf %566, %568 : vector<2x32xf32>
    %570 = math.tanh %569 : vector<2x32xf32>
    %cst_166 = arith.constant 1.000000e+00 : f32
    %571 = vector.broadcast %cst_166 : f32 to vector<2x32xf32>
    %572 = arith.subf %571, %565 : vector<2x32xf32>
    %573 = arith.mulf %572, %570 : vector<2x32xf32>
    %574 = arith.mulf %565, %541 : vector<2x32xf32>
    %575 = arith.addf %573, %574 : vector<2x32xf32>
    %c0_167 = arith.constant 0 : index
    %c0_168 = arith.constant 0 : index
    %576 = vector.load %arg9[%c0_167, %c0_168] : memref<16x32xf32, #tpu.memory_space<vmem>>, vector<2x32xf32>
    tpu.vector_store %arg9[%c0_167, %c0_168], %575 {strides = array<i32>} : memref<16x32xf32, #tpu.memory_space<vmem>>, vector<2x32xf32>,
    %c0_169 = arith.constant 0 : index
    %c0_170 = arith.constant 0 : index
    %c0_171 = arith.constant 0 : index
    %577 = vector.load %arg5[%c0_169, %c0_170, %c0_171] : memref<2x32x8xf32, #tpu.memory_space<vmem>>, vector<2x32x8xf32>
    %c0_172 = arith.constant 0 : index
    %c0_173 = arith.constant 0 : index
    %578 = vector.load %arg8[%c0_172, %c0_173] : memref<16x32xf32, #tpu.memory_space<vmem>>, vector<16x32xf32>
    %579 = vector.extract_strided_slice %577 {offsets = [0, 0, 0], sizes = [1, 32, 8], strides = [1, 1, 1]} : vector<2x32x8xf32> to vector<1x32x8xf32>
    %580 = vector.shape_cast %579 : vector<1x32x8xf32> to vector<32x8xf32>
    %cst_174 = arith.constant dense<0.000000e+00> : vector<16x8xf32>
    %581 = tpu.matmul %578, %580, %cst_174 {dimension_numbers = #tpu.dot_dimension_numbers<[1], [0], [0], [1], [0, 0, 1, 1], [], []>} : vector<16x32xf32>, vector<32x8xf32>, vector<16x8xf32> -> vector<16x8xf32>
    %c0_175 = arith.constant 0 : index
    %c0_176 = arith.constant 0 : index
    %582 = vector.load %arg9[%c0_175, %c0_176] : memref<16x32xf32, #tpu.memory_space<vmem>>, vector<16x32xf32>
    %583 = vector.extract_strided_slice %577 {offsets = [1, 0, 0], sizes = [1, 32, 8], strides = [1, 1, 1]} : vector<2x32x8xf32> to vector<1x32x8xf32>
    %584 = vector.shape_cast %583 : vector<1x32x8xf32> to vector<32x8xf32>
    %cst_177 = arith.constant dense<0.000000e+00> : vector<16x8xf32>
    %585 = tpu.matmul %582, %584, %cst_177 {dimension_numbers = #tpu.dot_dimension_numbers<[1], [0], [0], [1], [0, 0, 1, 1], [], []>} : vector<16x32xf32>, vector<32x8xf32>, vector<16x8xf32> -> vector<16x8xf32>
    %586 = arith.addf %581, %585 : vector<16x8xf32>
    %c0_178 = arith.constant 0 : index
    %c0_179 = arith.constant 0 : index
    %587 = vector.load %arg6[%c0_178, %c0_179] : memref<1x8xf32, #tpu.memory_space<vmem>>, vector<1x8xf32>
    %588 = vector.broadcast %587 : vector<1x8xf32> to vector<16x8xf32>
    %589 = arith.addf %586, %588 : vector<16x8xf32>
    %c0_180 = arith.constant 0 : index
    %c0_181 = arith.constant 0 : index
    %590 = vector.load %arg7[%c0_180, %c0_181] : memref<16x8xf32, #tpu.memory_space<vmem>>, vector<16x8xf32>
    tpu.vector_store %arg7[%c0_180, %c0_181], %589 {strides = array<i32>} : memref<16x8xf32, #tpu.memory_space<vmem>>, vector<16x8xf32>,
    return
  }
}

</mosaic_0001>

<bundles_post_ra>
// kernel: tpu_custom_call.1
= control target key start
LH: loop header
LB: loop body
LE: loop exit
PB: predicated region body
PF: predicated region fallthrough
CT: control target
= control target key end

     0   :  { %12 = vsyncpa [#allocation5], 0  ;;  %s2027_s0 = inlined_call_operand.vmem [shape: f32[16,32], index: 0, kind: input, shape index: {}]   ;;  %s2028_s1 = inlined_call_operand.vmem [shape: f32[2,32,96], index: 1, kind: input, shape index: {}]   ;;  %s2029_s2 = inlined_call_operand.hbm [shape: f32[2,32,96], index: 2, kind: input, shape index: {}]   ;;  %s2030_s3 = inlined_call_operand.vmem [shape: f32[2,1,96], index: 3, kind: input, shape index: {}]   ;;  %s2031_s4 = inlined_call_operand.hbm [shape: f32[2,1,96], index: 4, kind: input, shape index: {}]   ;;  %s2032_s5 = inlined_call_operand.vmem [shape: f32[2,32,8], index: 5, kind: input, shape index: {}]   ;;  %s2033_s6 = inlined_call_operand.vmem [shape: f32[1,8], index: 6, kind: input, shape index: {}]   ;;  %s2034_s7 = inlined_call_operand.vmem [shape: f32[16,8], index: 7, kind: output, shape index: {}]  }
   0x1   :  { %s22_s26 = sshll.u32 %s2029_s2, 4  ;;  %s23_s26 = int_to_ptr.hbm [resolvable:$true] %s22_s26 }
   0x2   :  { %13 = vsyncpa [#allocation7], 0  ;;  %s1564_s27 = smov [#allocation4]   ;;  %s37_s8 = sshll.u32 %s2031_s4, 4  ;;  %s38_s8 = int_to_ptr.hbm [resolvable:$true] %s37_s8 }
   0x3   :  { %s24_s28 = sshll.u32 %s1564_s27, 4  ;;  %s1565_s9 = smov 128   ;;  %s25_s28 = int_to_ptr.vmem [resolvable:$true] %s24_s28 }
   0x4   :  { %s1566_s10 = smov 8   ;;  %s1567_s11 = smov [#allocation6]  }
   0x5   :  { %30 = dma.hbm_to_vmem [thread:$0]  %s23_s26, 1024, %s25_s28, [#allocation5], %s1565_s9, %s1565_s9, %s1566_s10  }
   0x6   :  { %s39_s12 = sshll.u32 %s1567_s11, 4  ;;  %s1568_s13 = smov 16   ;;  %s40_s12 = int_to_ptr.vmem [resolvable:$true] %s39_s12 }
   0x7   :  { %s1569_s14 = smov 1  }
   0x8   :  { %45 = dma.hbm_to_vmem [thread:$0]  %s38_s8, 32, %s40_s12, [#allocation7], %s1568_s13, %s1568_s13, %s1569_s14  }
   0x9   :  { %1560 = dma.done.wait [#allocation5], 1024  }
   0xa   :  { %1561 = vsyncadd [#allocation5], 4294966272 }
   0xb   :  { %1562 = dma.done.wait [#allocation7], 32  }
   0xc   :  { %1563 = vsyncadd [#allocation7], 4294967264  ;;  %v63_v0 = vld [vmem:[%s2028_s1 + $0x18] sm:$0xff]  ;;  %v62_v1 = vld [vmem:[%s2028_s1 + $0x10] sm:$0xff]  ;;  %vm83_vm0 = vcmask 261120   ;;  %v1570_v10 = vmov 0.0  }
   0xd   :  { %1393 = vmatpush.msra.mxu2 %v63_v0  ;;  %102 = vmatpush.msra.mxu0 %v63_v0  ;;  %v61_v2 = vld [vmem:[%s2028_s1 + $0x8] sm:$0xff]  ;;  %v60_v3 = vld [vmem:[%s2028_s1] sm:$0xff]  ;;  %v1641_v6 = vld [vmem:[#allocation4 + $0x18] sm:$0xff]  ;;  %s1571_s26 = smov 64   ;;  %s1572_s27 = smov 96   ;;  %vm208_vm5 = vcmask 254976  }
   0xe   :  { %v1634_v4 = vld [vmem:[%s2027_s0 + $0x8] sm:$0xff]  ;;  %v1639_v5 = vld [vmem:[%s2027_s0] sm:$0xff]  ;;  %v1645_v7 = vld [vmem:[#allocation4 + $0x10] sm:$0xff] }
   0xf   :  { %1394 = vmatpush.msra.mxu2 %v62_v1  ;;  %103 = vmatpush.msra.mxu0 %v62_v1  ;;  %v1651_v8 = vld [vmem:[#allocation4 + $0x8] sm:$0xff]  ;;  %v1655_v9 = vld [vmem:[#allocation4] sm:$0xff]  ;;  %v67_v39 = vld [vmem:[%s2028_s1 + $0x38] sm:$0xff] }
  0x10   :  { %v1410_v11 = vld [vmem:[%s2030_s3] ss:$0 sm:$0xff]  ;;  %v66_v40 = vld [vmem:[%s2028_s1 + $0x30] sm:$0xff]  ;;  %1397 = vmatpush.msra.mxu3 %v67_v39  ;;  %128 = vmatpush.msra.mxu1 %v67_v39  ;;  %v65_v41 = vld [vmem:[%s2028_s1 + $0x28] sm:$0xff] }
  0x11   :  { %1395 = vmatpush.msra.mxu2 %v61_v2  ;;  %104 = vmatpush.msra.mxu0 %v61_v2  ;;  %v1675_v14 = vld [vmem:[#allocation6] ss:$0 sm:$0xff] }
  0x12   :  { %1398 = vmatpush.msra.mxu3 %v66_v40  ;;  %129 = vmatpush.msra.mxu1 %v66_v40  ;;  %v64_v42 = vld [vmem:[%s2028_s1 + $0x20] sm:$0xff] }
  0x13   :  { %1396 = vmatpush.msra.mxu2 %v60_v3  ;;  %105 = vmatpush.msra.mxu0 %v60_v3 }
  0x14   :  { %1372 = vmatmul.msk.f32.vlgmr.msra.gmra.mxu2 %vm83_vm0, %v1634_v4  ;;  %1371 = vmatmul.msk.f32.vlgmr.msra.gmra.mxu0 %vm83_vm0, %v1639_v5 }
  0x15   :  { %157 = vmatpush.msrb.mxu2 %v1641_v6  ;;  %446 = vmatpush.msrb.mxu0 %v1641_v6 }
  0x16   :  { %1399 = vmatpush.msra.mxu3 %v65_v41  ;;  %130 = vmatpush.msra.mxu1 %v65_v41 }
  0x17   :  { %158 = vmatpush.msrb.mxu2 %v1645_v7  ;;  %447 = vmatpush.msrb.mxu0 %v1645_v7 }
  0x18   :  { %1400 = vmatpush.msra.mxu3 %v64_v42  ;;  %131 = vmatpush.msra.mxu1 %v64_v42 }
  0x19   :  { %159 = vmatpush.msrb.mxu2 %v1651_v8  ;;  %448 = vmatpush.msrb.mxu0 %v1651_v8 }
  0x1a   :  { %1374 = vmatmul.msk.f32.vlgmr.msra.gmra.mxu3 %vm83_vm0, %v1634_v4  ;;  %1373 = vmatmul.msk.f32.vlgmr.msra.gmra.mxu1 %vm83_vm0, %v1639_v5 }
  0x1b   :  { %160 = vmatpush.msrb.mxu2 %v1655_v9  ;;  %449 = vmatpush.msrb.mxu0 %v1655_v9 }
  0x1c   :  { %161 = vmatmul.f32.vlgmr.msrb.gmra.mxu2 %v1570_v10  ;;  %224 = vmatpush.msrb.mxu3 %v1641_v6 }
  0x1d   :  { %298 = vmatpush.msra.mxu2 %v1641_v6  ;;  %513 = vmatpush.msrb.mxu1 %v1641_v6 }
  0x1e   :  { %225 = vmatpush.msrb.mxu3 %v1645_v7 }
  0x1f   :  { %299 = vmatpush.msra.mxu2 %v1645_v7  ;;  %514 = vmatpush.msrb.mxu1 %v1645_v7 }
  0x20   :  { %226 = vmatpush.msrb.mxu3 %v1651_v8 }
  0x21   :  { %300 = vmatpush.msra.mxu2 %v1651_v8  ;;  %515 = vmatpush.msrb.mxu1 %v1651_v8 }
  0x22   :  { %227 = vmatpush.msrb.mxu3 %v1655_v9 }
  0x23   :  { %301 = vmatpush.msra.mxu2 %v1655_v9  ;;  %516 = vmatpush.msrb.mxu1 %v1655_v9 }
  0x24   :  { %372 = vmatpush.msra.mxu3 %v1641_v6 }
  0x25   :  { %586 = vmatpush.msrb.mxu2 %v1641_v6 }
  0x26   :  { %373 = vmatpush.msra.mxu3 %v1645_v7 }
  0x27   :  { %587 = vmatpush.msrb.mxu2 %v1645_v7 }
  0x28   :  { %374 = vmatpush.msra.mxu3 %v1651_v8 }
  0x29   :  { %588 = vmatpush.msrb.mxu2 %v1651_v8 }
  0x2a   :  { %375 = vmatpush.msra.mxu3 %v1655_v9 }
  0x2b   :  { %589 = vmatpush.msrb.mxu2 %v1655_v9 }
  0x91   :  { %v107_v17 = vpop.f32.mrf.mxu0 }
  0x92   :  { %v1679_v18 = vadd.f32 %v1410_v11, %v107_v17 }
  0x97   :  { %v110_v12 = vpop.f32.mrf.mxu2 }
  0x98   :  { %v1673_v13 = vadd.f32 %v1410_v11, %v110_v12 }
  0x9d   :  { %v1720_v49 = vpop.f32.mrf.mxu3 }
  0x9f   :  { %v162_v15 = vpop.f32.mrf.mxu2 }
  0xa0   :  { %v163_v16 = vadd.f32 %v1675_v14, %v162_v15 }
  0xa2   :  { %186 = vrot.lane.b32.xlu0 %v163_v16, %s1571_s26  ;;  %v165_v19 = vadd.f32 %v163_v16, %v1679_v18 }
  0xa4   :  { %v166_v20 = vsub.f32 0.0, %v165_v19 }
  0xa6   :  { %v167_v21 = vmul.f32 1.442695, %v166_v20 }
  0xa8   :  { %1415 = vpow2.f32 %v167_v21 }
  0xae   :  { %v1416_v22 = vpop.eup %1415 }
  0xaf   :  { %v169_v23 = vadd.f32 1.0, %v1416_v22 }
  0xb1   :  { %1417 = vrcp.f32 %v169_v23  ;;  %v181_v29 = vand.u32 2147483648, %v169_v23  ;;  %vm175_vm2 = vweird.f32 %v169_v23  ;;  %v179_v30 = vand.u32 2147483647, %v169_v23 }
  0xb3   :  { %v182_v32 = vor.u32 1.1754944e-38, %v181_v29  ;;  %vm180_vm4 = vcmp.eq.f32.partialorder %v179_v30, 8.507059e+37 }
  0xb7   :  { %v1418_v24 = vpop.eup %1417 }
  0xb8   :  { %v171_v25 = vmul.f32 %v1418_v24, %v169_v23  ;;  %vm176_vm1 = vweird.f32 %v1418_v24 }
  0xb9   :  { %vm177_vm3 = vmor %vm175_vm2, %vm176_vm1 }
  0xba   :  { %v172_v26 = vsub.f32 1.0, %v171_v25 }
  0xbc   :  { %v173_v27 = vmul.f32 %v1418_v24, %v172_v26 }
  0xbe   :  { %v174_v28 = vadd.f32 %v1418_v24, %v173_v27 }
  0xc0   :  { %v178_v31 = vsel %vm177_vm3, %v1418_v24, %v174_v28 }
  0xc1   :  { %v183_v34 = vsel %vm180_vm4, %v182_v32, %v178_v31 }
  0xc2   :  { %v196_v43 = vsub.f32 1.0, %v183_v34  ;;  %v202_v45 = vmul.f32 0.0, %v183_v34 }
 0x114   :  { %v187_v33 = vpop.permute.xlu0 %186 }
 0x115   :  { %v189_v35 = vmul.f32 %v187_v33, %v183_v34 }
 0x117   :  { %191 = vrot.lane.b32.xlu0 %v189_v35, %s1571_s26 }
 0x189   :  { %v192_v36 = vpop.permute.xlu0 %191 }
 0x18a   :  { %v194_v37 = vadd.f32 %v192_v36, %v1679_v18 }
 0x18c   :  { %1419 = vtanh.f32 %v194_v37 }
 0x192   :  { %v1420_v38 = vpop.eup %1419 }
 0x193   :  { %198 = vrot.lane.b32.xlu1 %v1420_v38, %s1572_s27 }
 0x205   :  { %v199_v44 = vpop.permute.xlu1 %198 }
 0x206   :  { %v201_v46 = vmul.f32 %v199_v44, %v196_v43 }
 0x208   :  { %v203_v47 = vadd.f32 %v202_v45, %v201_v46 }
 0x20a   :  { %205 = vrot.lane.b32.xlu1 %v203_v47, %s1572_s27  ;;  %v271_v2 = vrot.slane %v203_v47, 6 }
 0x27c   :  { %v206_v48 = vpop.permute.xlu1 %205 }
 0x27d   :  { %209 = vst.msk [vmem:[#allocation2] sm:$0x3] %vm208_vm5, %v206_v48  ;;  %1375 = vmatmul.msk.f32.vlgmr.msrb.gmra.mxu3 %vm83_vm0, %v206_v48 }
 0x27e   :  { %659 = vmatpush.msrb.mxu3 %v1641_v6 }
 0x280   :  { %660 = vmatpush.msrb.mxu3 %v1645_v7 }
 0x282   :  { %661 = vmatpush.msrb.mxu3 %v1651_v8 }
 0x284   :  { %662 = vmatpush.msrb.mxu3 %v1655_v9 }
 0x300   :  { %v229_v50 = vpop.f32.mrf.mxu3 }
 0x301   :  { %v230_v51 = vadd.f32 %v1675_v14, %v229_v50 }
 0x303   :  { %v233_v52 = vrot.slane %v230_v51, 6 }
 0x305   :  { %v235_v53 = vadd.f32 %v233_v52, %v1679_v18  ;;  %255 = vrot.lane.b32.xlu2 %v233_v52, %s1571_s26 }
 0x307   :  { %v236_v54 = vsub.f32 0.0, %v235_v53 }
 0x309   :  { %v237_v55 = vmul.f32 1.442695, %v236_v54 }
 0x30b   :  { %1421 = vpow2.f32 %v237_v55 }
 0x311   :  { %v1422_v56 = vpop.eup %1421 }
 0x312   :  { %v239_v57 = vadd.f32 1.0, %v1422_v56 }
 0x314   :  { %1423 = vrcp.f32 %v239_v57  ;;  %v251_v61 = vand.u32 2147483648, %v239_v57  ;;  %v249_v63 = vand.u32 2147483647, %v239_v57  ;;  %vm245_vm7 = vweird.f32 %v239_v57 }
 0x316   :  { %v252_v1 = vor.u32 1.1754944e-38, %v251_v61  ;;  %vm250_vm9 = vcmp.eq.f32.partialorder %v249_v63, 8.507059e+37 }
 0x31a   :  { %v1424_v58 = vpop.eup %1423 }
 0x31b   :  { %v241_v59 = vmul.f32 %v1424_v58, %v239_v57  ;;  %vm246_vm6 = vweird.f32 %v1424_v58 }
 0x31c   :  { %vm247_vm8 = vmor %vm245_vm7, %vm246_vm6 }
 0x31d   :  { %v242_v60 = vsub.f32 1.0, %v241_v59 }
 0x31f   :  { %v243_v62 = vmul.f32 %v1424_v58, %v242_v60 }
 0x321   :  { %v244_v0 = vadd.f32 %v1424_v58, %v243_v62 }
 0x323   :  { %v248_v3 = vsel %vm247_vm8, %v1424_v58, %v244_v0 }
 0x324   :  { %v253_v4 = vsel %vm250_vm9, %v252_v1, %v248_v3 }
 0x325   :  { %v273_v5 = vmul.f32 %v271_v2, %v253_v4  ;;  %v265_v12 = vsub.f32 1.0, %v253_v4 }
 0x35f   :  { %v256_v6 = vpop.permute.xlu2 %255 }
 0x360   :  { %v258_v7 = vmul.f32 %v256_v6, %v253_v4 }
 0x362   :  { %260 = vrot.lane.b32.xlu2 %v258_v7, %s1571_s26 }
 0x3bc   :  { %v261_v8 = vpop.permute.xlu2 %260 }
 0x3bd   :  { %v263_v9 = vadd.f32 %v261_v8, %v1679_v18 }
 0x3bf   :  { %1425 = vtanh.f32 %v263_v9 }
 0x3c5   :  { %v1426_v11 = vpop.eup %1425 }
 0x3c6   :  { %267 = vrot.lane.b32.xlu0 %v1426_v11, %s1572_s27 }
 0x438   :  { %v268_v15 = vpop.permute.xlu0 %267 }
 0x439   :  { %v270_v16 = vmul.f32 %v268_v15, %v265_v12 }
 0x43b   :  { %v1728_v17 = vadd.f32 %v273_v5, %v270_v16 }
 0x43d   :  { %v281_v19 = vrot.slane %v1728_v17, 2  ;;  %v345_v45 = vrot.slane %v1728_v17, 6 }
 0x43f   :  { %282 = vrot.lane.b32.xlu1 %v281_v19, %s1572_s27 }
 0x4b1   :  { %v283_v20 = vpop.permute.xlu1 %282 }
 0x4b2   :  { %1376 = vmatmul.msk.f32.vlgmr.msra.gmra.mxu2 %vm83_vm0, %v283_v20 }
 0x535   :  { %v303_v21 = vpop.f32.mrf.mxu2 }
 0x536   :  { %v304_v22 = vadd.f32 %v1675_v14, %v303_v21 }
 0x538   :  { %v307_v23 = vrot.slane %v304_v22, 4 }
 0x53a   :  { %329 = vrot.lane.b32.xlu2 %v307_v23, %s1571_s26  ;;  %v309_v24 = vadd.f32 %v307_v23, %v1679_v18 }
 0x53c   :  { %v310_v25 = vsub.f32 0.0, %v309_v24  ;;  %v1758_v24 = vld [vmem:[#allocation4 + $0x38] sm:$0xff] }
 0x53d   :  { %730 = vmatpush.msra.mxu0 %v1758_v24  ;;  %801 = vmatpush.msra.mxu1 %v1758_v24 }
 0x53e   :  { %v311_v26 = vmul.f32 1.442695, %v310_v25  ;;  %v1764_v25 = vld [vmem:[#allocation4 + $0x28] sm:$0xff]  ;;  %874 = vmatpush.msra.mxu2 %v1758_v24 }
 0x540   :  { %1427 = vpow2.f32 %v311_v26  ;;  %v1770_v26 = vld [vmem:[#allocation4 + $0x20] sm:$0xff] }
 0x546   :  { %v1428_v27 = vpop.eup %1427 }
 0x547   :  { %v313_v28 = vadd.f32 1.0, %v1428_v27 }
 0x549   :  { %1429 = vrcp.f32 %v313_v28  ;;  %v325_v34 = vand.u32 2147483648, %v313_v28  ;;  %vm319_vm11 = vweird.f32 %v313_v28  ;;  %v323_v35 = vand.u32 2147483647, %v313_v28 }
 0x54b   :  { %v326_v37 = vor.u32 1.1754944e-38, %v325_v34  ;;  %vm324_vm13 = vcmp.eq.f32.partialorder %v323_v35, 8.507059e+37  ;;  %v1797_v34 = vld [vmem:[%s2030_s3 + $0x1] ss:$0 sm:$0xff] }
 0x54f   :  { %v1430_v29 = vpop.eup %1429 }
 0x550   :  { %v315_v30 = vmul.f32 %v1430_v29, %v313_v28  ;;  %vm320_vm10 = vweird.f32 %v1430_v29 }
 0x551   :  { %vm321_vm12 = vmor %vm319_vm11, %vm320_vm10 }
 0x552   :  { %v316_v31 = vsub.f32 1.0, %v315_v30  ;;  %v1790_v30 = vld [vmem:[#allocation6 + $0x1] ss:$0 sm:$0xff] }
 0x554   :  { %v317_v32 = vmul.f32 %v1430_v29, %v316_v31 }
 0x556   :  { %v318_v33 = vadd.f32 %v1430_v29, %v317_v32 }
 0x558   :  { %v322_v36 = vsel %vm321_vm12, %v1430_v29, %v318_v33 }
 0x559   :  { %v327_v39 = vsel %vm324_vm13, %v326_v37, %v322_v36 }
 0x55a   :  { %v339_v44 = vsub.f32 1.0, %v327_v39  ;;  %v347_v47 = vmul.f32 %v345_v45, %v327_v39 }
 0x594   :  { %v330_v38 = vpop.permute.xlu2 %329 }
 0x595   :  { %v332_v40 = vmul.f32 %v330_v38, %v327_v39 }
 0x597   :  { %334 = vrot.lane.b32.xlu0 %v332_v40, %s1571_s26 }
 0x609   :  { %v335_v41 = vpop.permute.xlu0 %334 }
 0x60a   :  { %v337_v42 = vadd.f32 %v335_v41, %v1679_v18 }
 0x60c   :  { %1431 = vtanh.f32 %v337_v42 }
 0x612   :  { %v1432_v43 = vpop.eup %1431 }
 0x613   :  { %341 = vrot.lane.b32.xlu1 %v1432_v43, %s1572_s27 }
 0x685   :  { %v342_v46 = vpop.permute.xlu1 %341 }
 0x686   :  { %v344_v48 = vmul.f32 %v342_v46, %v339_v44 }
 0x688   :  { %v1740_v50 = vadd.f32 %v347_v47, %v344_v48 }
 0x68a   :  { %v355_v51 = vrot.slane %v1740_v50, 4  ;;  %v419_v16 = vrot.slane %v1740_v50, 6 }
 0x68c   :  { %356 = vrot.lane.b32.xlu2 %v355_v51, %s1572_s27 }
 0x6e6   :  { %v357_v52 = vpop.permute.xlu2 %356 }
 0x6e7   :  { %1377 = vmatmul.msk.f32.vlgmr.msra.gmra.mxu3 %vm83_vm0, %v357_v52 }
 0x6e8   :  { %947 = vmatpush.msra.mxu3 %v1758_v24 }
 0x76a   :  { %v377_v53 = vpop.f32.mrf.mxu3 }
 0x76b   :  { %v378_v54 = vadd.f32 %v1675_v14, %v377_v53 }
 0x76d   :  { %v381_v55 = vrot.slane %v378_v54, 2 }
 0x76f   :  { %403 = vrot.lane.b32.xlu0 %v381_v55, %s1571_s26  ;;  %v383_v56 = vadd.f32 %v381_v55, %v1679_v18 }
 0x771   :  { %v384_v57 = vsub.f32 0.0, %v383_v56 }
 0x773   :  { %v385_v58 = vmul.f32 1.442695, %v384_v57 }
 0x775   :  { %1433 = vpow2.f32 %v385_v58 }
 0x77b   :  { %v1434_v59 = vpop.eup %1433 }
 0x77c   :  { %v387_v60 = vadd.f32 1.0, %v1434_v59 }
 0x77e   :  { %1435 = vrcp.f32 %v387_v60  ;;  %v399_v2 = vand.u32 2147483648, %v387_v60  ;;  %vm393_vm15 = vweird.f32 %v387_v60  ;;  %v397_v3 = vand.u32 2147483647, %v387_v60 }
 0x780   :  { %v400_v5 = vor.u32 1.1754944e-38, %v399_v2  ;;  %vm398_vm2 = vcmp.eq.f32.partialorder %v397_v3, 8.507059e+37 }
 0x784   :  { %v1436_v61 = vpop.eup %1435 }
 0x785   :  { %v389_v62 = vmul.f32 %v1436_v61, %v387_v60  ;;  %vm394_vm14 = vweird.f32 %v1436_v61 }
 0x786   :  { %vm395_vm1 = vmor %vm393_vm15, %vm394_vm14 }
 0x787   :  { %v390_v63 = vsub.f32 1.0, %v389_v62 }
 0x789   :  { %v391_v0 = vmul.f32 %v1436_v61, %v390_v63 }
 0x78b   :  { %v392_v1 = vadd.f32 %v1436_v61, %v391_v0 }
 0x78d   :  { %v396_v4 = vsel %vm395_vm1, %v1436_v61, %v392_v1 }
 0x78e   :  { %v401_v7 = vsel %vm398_vm2, %v400_v5, %v396_v4 }
 0x78f   :  { %v413_v15 = vsub.f32 1.0, %v401_v7  ;;  %v421_v20 = vmul.f32 %v419_v16, %v401_v7 }
 0x7e1   :  { %v404_v6 = vpop.permute.xlu0 %403 }
 0x7e2   :  { %v406_v8 = vmul.f32 %v404_v6, %v401_v7 }
 0x7e4   :  { %408 = vrot.lane.b32.xlu1 %v406_v8, %s1571_s26 }
 0x856   :  { %v409_v9 = vpop.permute.xlu1 %408 }
 0x857   :  { %v411_v11 = vadd.f32 %v409_v9, %v1679_v18  ;;  %v1760_v18 = vld [vmem:[#allocation4 + $0x30] sm:$0xff] }
 0x858   :  { %731 = vmatpush.msra.mxu0 %v1760_v18  ;;  %802 = vmatpush.msra.mxu1 %v1760_v18 }
 0x859   :  { %1437 = vtanh.f32 %v411_v11  ;;  %875 = vmatpush.msra.mxu2 %v1760_v18  ;;  %948 = vmatpush.msra.mxu3 %v1760_v18 }
 0x85a   :  { %732 = vmatpush.msra.mxu0 %v1764_v25  ;;  %803 = vmatpush.msra.mxu1 %v1764_v25 }
 0x85b   :  { %876 = vmatpush.msra.mxu2 %v1764_v25  ;;  %949 = vmatpush.msra.mxu3 %v1764_v25 }
 0x85c   :  { %733 = vmatpush.msra.mxu0 %v1770_v26  ;;  %804 = vmatpush.msra.mxu1 %v1770_v26 }
 0x85d   :  { %877 = vmatpush.msra.mxu2 %v1770_v26  ;;  %950 = vmatpush.msra.mxu3 %v1770_v26 }
 0x85f   :  { %v1438_v12 = vpop.eup %1437 }
 0x860   :  { %415 = vrot.lane.b32.xlu2 %v1438_v12, %s1572_s27 }
 0x8ba   :  { %v416_v19 = vpop.permute.xlu2 %415 }
 0x8bb   :  { %v418_v21 = vmul.f32 %v416_v19, %v413_v15 }
 0x8bd   :  { %v1752_v22 = vadd.f32 %v421_v20, %v418_v21 }
 0x8bf   :  { %v429_v23 = vrot.slane %v1752_v22, 6 }
 0x8c1   :  { %430 = vrot.lane.b32.xlu0 %v429_v23, %s1572_s27 }
 0x933   :  { %v431_v27 = vpop.permute.xlu0 %430 }
 0x934   :  { %1378 = vmatmul.msk.f32.vlgmr.msrb.gmra.mxu0 %vm83_vm0, %v431_v27 }
 0x935   :  { %1014 = vmatpush.msrb.mxu0 %v1758_v24 }
 0x937   :  { %1015 = vmatpush.msrb.mxu0 %v1760_v18 }
 0x939   :  { %1016 = vmatpush.msrb.mxu0 %v1764_v25 }
 0x93b   :  { %1017 = vmatpush.msrb.mxu0 %v1770_v26 }
 0x93c   :  { %734 = vmatmul.f32.vlgmr.msra.gmra.mxu0 %v1570_v10  ;;  %v1801_v10 = vadd.f32 %v1797_v34, %v1720_v49 }
 0x9b1   :  { %v451_v28 = vpop.f32.mrf.mxu0 }
 0x9b2   :  { %v452_v29 = vadd.f32 %v1675_v14, %v451_v28 }
 0x9b4   :  { %475 = vrot.lane.b32.xlu1 %v452_v29, %s1571_s26  ;;  %v454_v38 = vadd.f32 %v452_v29, %v1673_v13 }
 0x9b6   :  { %v455_v40 = vsub.f32 0.0, %v454_v38 }
 0x9b8   :  { %v456_v42 = vmul.f32 1.442695, %v455_v40 }
 0x9b9   :  { %v735_v31 = vpop.f32.mrf.mxu0 }
 0x9ba   :  { %v736_v32 = vadd.f32 %v1790_v30, %v735_v31 }
 0x9bc   :  { %v739_v33 = vrot.slane %v736_v32, 2 }
 0x9be   :  { %761 = vrot.lane.b32.xlu2 %v739_v33, %s1571_s26  ;;  %v741_v35 = vadd.f32 %v739_v33, %v1801_v10 }
 0x9c0   :  { %v742_v36 = vsub.f32 0.0, %v741_v35 }
 0x9c2   :  { %v743_v37 = vmul.f32 1.442695, %v742_v36  ;;  %v1828_v36 = vpop.f32.mrf.mxu1 }
 0x9c4   :  { %1439 = vpow2.f32 %v743_v37 }
 0x9ca   :  { %v1440_v39 = vpop.eup %1439 }
 0x9cb   :  { %v745_v41 = vadd.f32 1.0, %v1440_v39 }
 0x9cd   :  { %1441 = vrcp.f32 %v745_v41  ;;  %v757_v52 = vand.u32 2147483648, %v745_v41  ;;  %vm751_vm4 = vweird.f32 %v745_v41  ;;  %v755_v53 = vand.u32 2147483647, %v745_v41 }
 0x9ce   :  { %1443 = vpow2.f32 %v456_v42 }
 0x9cf   :  { %v758_v56 = vor.u32 1.1754944e-38, %v757_v52  ;;  %vm756_vm7 = vcmp.eq.f32.partialorder %v755_v53, 8.507059e+37 }
 0x9d3   :  { %v1442_v43 = vpop.eup %1441 }
 0x9d4   :  { %v1444_v44 = vpop.eup %1443  ;;  %v747_v45 = vmul.f32 %v1442_v43, %v745_v41  ;;  %vm752_vm3 = vweird.f32 %v1442_v43 }
 0x9d5   :  { %v458_v46 = vadd.f32 1.0, %v1444_v44  ;;  %vm753_vm6 = vmor %vm751_vm4, %vm752_vm3 }
 0x9d6   :  { %v748_v47 = vsub.f32 1.0, %v747_v45 }
 0x9d7   :  { %1445 = vrcp.f32 %v458_v46  ;;  %v470_v63 = vand.u32 2147483648, %v458_v46  ;;  %vm464_vm9 = vweird.f32 %v458_v46  ;;  %v468_v0 = vand.u32 2147483647, %v458_v46 }
 0x9d8   :  { %v749_v49 = vmul.f32 %v1442_v43, %v748_v47 }
 0x9d9   :  { %v471_v2 = vor.u32 1.1754944e-38, %v470_v63  ;;  %vm469_vm11 = vcmp.eq.f32.partialorder %v468_v0, 8.507059e+37 }
 0x9da   :  { %v750_v51 = vadd.f32 %v1442_v43, %v749_v49 }
 0x9dc   :  { %v754_v55 = vsel %vm753_vm6, %v1442_v43, %v750_v51 }
 0x9dd   :  { %v1446_v48 = vpop.eup %1445  ;;  %v759_v59 = vsel %vm756_vm7, %v758_v56, %v754_v55 }
 0x9de   :  { %v460_v54 = vmul.f32 %v1446_v48, %v458_v46  ;;  %vm465_vm8 = vweird.f32 %v1446_v48  ;;  %v771_v27 = vsub.f32 1.0, %v759_v59  ;;  %v777_v29 = vmul.f32 0.0, %v759_v59 }
 0x9df   :  { %vm466_vm10 = vmor %vm464_vm9, %vm465_vm8 }
 0x9e0   :  { %v461_v57 = vsub.f32 1.0, %v460_v54 }
 0x9e2   :  { %v462_v61 = vmul.f32 %v1446_v48, %v461_v57 }
 0x9e4   :  { %v463_v62 = vadd.f32 %v1446_v48, %v462_v61 }
 0x9e6   :  { %v467_v1 = vsel %vm466_vm10, %v1446_v48, %v463_v62 }
 0x9e7   :  { %v472_v4 = vsel %vm469_vm11, %v471_v2, %v467_v1 }
 0x9e8   :  { %v485_v15 = vsub.f32 1.0, %v472_v4  ;;  %v492_v19 = vmul.f32 %v472_v4, %v429_v23 }
 0xa18   :  { %v762_v58 = vpop.permute.xlu2 %761 }
 0xa19   :  { %v764_v60 = vmul.f32 %v762_v58, %v759_v59 }
 0xa1b   :  { %766 = vrot.lane.b32.xlu1 %v764_v60, %s1571_s26 }
 0xa26   :  { %v476_v3 = vpop.permute.xlu1 %475 }
 0xa27   :  { %v478_v5 = vmul.f32 %v476_v3, %v472_v4 }
 0xa29   :  { %480 = vrot.lane.b32.xlu0 %v478_v5, %s1571_s26 }
 0xa8d   :  { %v767_v6 = vpop.permute.xlu1 %766 }
 0xa8e   :  { %v769_v7 = vadd.f32 %v767_v6, %v1801_v10 }
 0xa90   :  { %1447 = vtanh.f32 %v769_v7 }
 0xa96   :  { %v1448_v8 = vpop.eup %1447 }
 0xa97   :  { %773 = vrot.lane.b32.xlu0 %v1448_v8, %s1572_s27 }
 0xa9b   :  { %v481_v9 = vpop.permute.xlu0 %480 }
 0xa9c   :  { %v483_v11 = vadd.f32 %v481_v9, %v1673_v13 }
 0xa9e   :  { %1449 = vtanh.f32 %v483_v11 }
 0xaa4   :  { %v1450_v12 = vpop.eup %1449 }
 0xaa5   :  { %487 = vrot.lane.b32.xlu2 %v1450_v12, %s1572_s27 }
 0xaff   :  { %v488_v16 = vpop.permute.xlu2 %487 }
 0xb00   :  { %v490_v20 = vmul.f32 %v488_v16, %v485_v15 }
 0xb02   :  { %v1813_v21 = vadd.f32 %v492_v19, %v490_v20 }
 0xb04   :  { %495 = vrot.lane.b32.xlu1 %v1813_v21, %s1572_s27 }
 0xb09   :  { %v774_v28 = vpop.permute.xlu0 %773 }
 0xb0a   :  { %v776_v31 = vmul.f32 %v774_v28, %v771_v27 }
 0xb0c   :  { %v1817_v32 = vadd.f32 %v777_v29, %v776_v31 }
 0xb0e   :  { %v784_v33 = vrot.slane %v1817_v32, 6 }
 0xb10   :  { %785 = vrot.lane.b32.xlu2 %v784_v33, %s1572_s27  ;;  %v560_v33 = vrot.slane %v1813_v21, 6 }
 0xb6a   :  { %v786_v23 = vpop.permute.xlu2 %785 }
 0xb76   :  { %v496_v35 = vpop.permute.xlu1 %495 }
 0xb77   :  { %498 = vst.msk [vmem:[#allocation2 + $0x8] sm:$0x3] %vm208_vm5, %v496_v35  ;;  %1379 = vmatmul.msk.f32.vlgmr.msrb.gmra.mxu1 %vm83_vm0, %v496_v35 }
 0xb78   :  { %1087 = vmatpush.msrb.mxu1 %v1758_v24 }
 0xb7a   :  { %1088 = vmatpush.msrb.mxu1 %v1760_v18 }
 0xb7c   :  { %1089 = vmatpush.msrb.mxu1 %v1764_v25 }
 0xb7e   :  { %1090 = vmatpush.msrb.mxu1 %v1770_v26 }
 0xb7f   :  { %1382 = vmatmul.msk.f32.vlgmr.msra.gmra.mxu1 %vm83_vm0, %v786_v23 }
 0xbf4   :  { %v518_v37 = vpop.f32.mrf.mxu1 }
 0xbf5   :  { %v519_v38 = vadd.f32 %v1675_v14, %v518_v37 }
 0xbf7   :  { %v522_v39 = vrot.slane %v519_v38, 6 }
 0xbf9   :  { %544 = vrot.lane.b32.xlu0 %v522_v39, %s1571_s26  ;;  %v524_v43 = vadd.f32 %v522_v39, %v1673_v13 }
 0xbfb   :  { %v525_v44 = vsub.f32 0.0, %v524_v43 }
 0xbfc   :  { %v806_v40 = vpop.f32.mrf.mxu1 }
 0xbfd   :  { %v807_v41 = vadd.f32 %v1790_v30, %v806_v40  ;;  %v526_v45 = vmul.f32 1.442695, %v525_v44 }
 0xbff   :  { %v810_v42 = vrot.slane %v807_v41, 4  ;;  %1451 = vpow2.f32 %v526_v45 }
 0xc01   :  { %832 = vrot.lane.b32.xlu1 %v810_v42, %s1571_s26  ;;  %v812_v46 = vadd.f32 %v810_v42, %v1801_v10  ;;  %v848_v42 = vrot.slane %v1817_v32, 2 }
 0xc03   :  { %v813_v47 = vsub.f32 0.0, %v812_v46 }
 0xc05   :  { %v814_v49 = vmul.f32 1.442695, %v813_v47  ;;  %v1452_v48 = vpop.eup %1451 }
 0xc06   :  { %v528_v51 = vadd.f32 1.0, %v1452_v48 }
 0xc07   :  { %1453 = vpow2.f32 %v814_v49 }
 0xc08   :  { %1455 = vrcp.f32 %v528_v51  ;;  %v540_v62 = vand.u32 2147483648, %v528_v51  ;;  %vm534_vm13 = vweird.f32 %v528_v51  ;;  %v538_v63 = vand.u32 2147483647, %v528_v51 }
 0xc0a   :  { %v541_v2 = vor.u32 1.1754944e-38, %v540_v62  ;;  %vm539_vm15 = vcmp.eq.f32.partialorder %v538_v63, 8.507059e+37 }
 0xc0d   :  { %v1454_v52 = vpop.eup %1453 }
 0xc0e   :  { %v816_v53 = vadd.f32 1.0, %v1454_v52  ;;  %v1456_v54 = vpop.eup %1455 }
 0xc0f   :  { %v530_v55 = vmul.f32 %v1456_v54, %v528_v51  ;;  %vm535_vm12 = vweird.f32 %v1456_v54 }
 0xc10   :  { %1457 = vrcp.f32 %v816_v53  ;;  %vm536_vm14 = vmor %vm534_vm13, %vm535_vm12  ;;  %v828_v7 = vand.u32 2147483648, %v816_v53  ;;  %vm822_vm2 = vweird.f32 %v816_v53  ;;  %v826_v8 = vand.u32 2147483647, %v816_v53 }
 0xc11   :  { %v531_v56 = vsub.f32 1.0, %v530_v55 }
 0xc12   :  { %v829_v11 = vor.u32 1.1754944e-38, %v828_v7  ;;  %vm827_vm4 = vcmp.eq.f32.partialorder %v826_v8, 8.507059e+37 }
 0xc13   :  { %v532_v58 = vmul.f32 %v1456_v54, %v531_v56 }
 0xc15   :  { %v533_v60 = vadd.f32 %v1456_v54, %v532_v58 }
 0xc16   :  { %v1458_v57 = vpop.eup %1457 }
 0xc17   :  { %v818_v59 = vmul.f32 %v1458_v57, %v816_v53  ;;  %v537_v0 = vsel %vm536_vm14, %v1456_v54, %v533_v60  ;;  %vm823_vm1 = vweird.f32 %v1458_v57 }
 0xc18   :  { %v542_v3 = vsel %vm539_vm15, %v541_v2, %v537_v0  ;;  %vm824_vm3 = vmor %vm822_vm2, %vm823_vm1 }
 0xc19   :  { %v819_v61 = vsub.f32 1.0, %v818_v59  ;;  %v554_v35 = vsub.f32 1.0, %v542_v3  ;;  %v562_v37 = vmul.f32 %v560_v33, %v542_v3 }
 0xc1b   :  { %v820_v1 = vmul.f32 %v1458_v57, %v819_v61 }
 0xc1d   :  { %v821_v6 = vadd.f32 %v1458_v57, %v820_v1 }
 0xc1f   :  { %v825_v9 = vsel %vm824_vm3, %v1458_v57, %v821_v6 }
 0xc20   :  { %v830_v15 = vsel %vm827_vm4, %v829_v11, %v825_v9 }
 0xc21   :  { %v842_v41 = vsub.f32 1.0, %v830_v15  ;;  %v850_v44 = vmul.f32 %v848_v42, %v830_v15 }
 0xc6b   :  { %v545_v4 = vpop.permute.xlu0 %544 }
 0xc6c   :  { %v547_v5 = vmul.f32 %v545_v4, %v542_v3 }
 0xc6e   :  { %549 = vrot.lane.b32.xlu2 %v547_v5, %s1571_s26 }
 0xc73   :  { %v833_v12 = vpop.permute.xlu1 %832 }
 0xc74   :  { %v835_v16 = vmul.f32 %v833_v12, %v830_v15 }
 0xc76   :  { %837 = vrot.lane.b32.xlu0 %v835_v16, %s1571_s26 }
 0xcc8   :  { %v550_v19 = vpop.permute.xlu2 %549 }
 0xcc9   :  { %v552_v20 = vadd.f32 %v550_v19, %v1673_v13 }
 0xccb   :  { %1459 = vtanh.f32 %v552_v20 }
 0xcd1   :  { %v1460_v27 = vpop.eup %1459 }
 0xcd2   :  { %556 = vrot.lane.b32.xlu1 %v1460_v27, %s1572_s27 }
 0xce8   :  { %v838_v28 = vpop.permute.xlu0 %837 }
 0xce9   :  { %v840_v29 = vadd.f32 %v838_v28, %v1801_v10 }
 0xceb   :  { %1461 = vtanh.f32 %v840_v29 }
 0xcf1   :  { %v1462_v31 = vpop.eup %1461 }
 0xcf2   :  { %844 = vrot.lane.b32.xlu2 %v1462_v31, %s1572_s27 }
 0xd44   :  { %v557_v23 = vpop.permute.xlu1 %556 }
 0xd45   :  { %v559_v38 = vmul.f32 %v557_v23, %v554_v35 }
 0xd47   :  { %v1843_v39 = vadd.f32 %v562_v37, %v559_v38 }
 0xd49   :  { %v569_v40 = vrot.slane %v1843_v39, 2 }
 0xd4b   :  { %570 = vrot.lane.b32.xlu0 %v569_v40, %s1572_s27 }
 0xd4c   :  { %v845_v43 = vpop.permute.xlu2 %844 }
 0xd4d   :  { %v847_v45 = vmul.f32 %v845_v43, %v842_v41 }
 0xd4f   :  { %v1848_v46 = vadd.f32 %v850_v44, %v847_v45 }
 0xd51   :  { %v857_v21 = vrot.slane %v1848_v46, 4 }
 0xd53   :  { %858 = vrot.lane.b32.xlu1 %v857_v21, %s1572_s27 }
 0xdbd   :  { %v571_v47 = vpop.permute.xlu0 %570 }
 0xdbe   :  { %1380 = vmatmul.msk.f32.vlgmr.msrb.gmra.mxu2 %vm83_vm0, %v571_v47  ;;  %v633_v47 = vrot.slane %v1843_v39, 6 }
 0xdbf   :  { %1160 = vmatpush.msrb.mxu2 %v1758_v24 }
 0xdc1   :  { %1161 = vmatpush.msrb.mxu2 %v1760_v18 }
 0xdc3   :  { %1162 = vmatpush.msrb.mxu2 %v1764_v25 }
 0xdc5   :  { %v859_v49 = vpop.permute.xlu1 %858  ;;  %1163 = vmatpush.msrb.mxu2 %v1770_v26 }
 0xdc6   :  { %1383 = vmatmul.msk.f32.vlgmr.msra.gmra.mxu2 %vm83_vm0, %v859_v49 }
 0xe41   :  { %v591_v48 = vpop.f32.mrf.mxu2 }
 0xe42   :  { %v592_v51 = vadd.f32 %v1675_v14, %v591_v48 }
 0xe44   :  { %v595_v52 = vrot.slane %v592_v51, 4 }
 0xe46   :  { %617 = vrot.lane.b32.xlu2 %v595_v52, %s1571_s26  ;;  %v597_v56 = vadd.f32 %v595_v52, %v1673_v13 }
 0xe48   :  { %v598_v57 = vsub.f32 0.0, %v597_v56 }
 0xe49   :  { %v879_v53 = vpop.f32.mrf.mxu2 }
 0xe4a   :  { %v880_v54 = vadd.f32 %v1790_v30, %v879_v53  ;;  %v599_v58 = vmul.f32 1.442695, %v598_v57 }
 0xe4c   :  { %v883_v55 = vrot.slane %v880_v54, 6  ;;  %1463 = vpow2.f32 %v599_v58 }
 0xe4e   :  { %905 = vrot.lane.b32.xlu0 %v883_v55, %s1571_s26  ;;  %v885_v14 = vadd.f32 %v883_v55, %v1801_v10  ;;  %v921_v55 = vrot.slane %v1848_v46, 2 }
 0xe50   :  { %v886_v63 = vsub.f32 0.0, %v885_v14 }
 0xe52   :  { %v1464_v59 = vpop.eup %1463  ;;  %v887_v1 = vmul.f32 1.442695, %v886_v63 }
 0xe53   :  { %v601_v60 = vadd.f32 1.0, %v1464_v59 }
 0xe55   :  { %1465 = vrcp.f32 %v601_v60  ;;  %v613_v4 = vand.u32 2147483648, %v601_v60  ;;  %vm607_vm7 = vweird.f32 %v601_v60  ;;  %v611_v5 = vand.u32 2147483647, %v601_v60 }
 0xe56   :  { %1467 = vpow2.f32 %v887_v1 }
 0xe57   :  { %v614_v8 = vor.u32 1.1754944e-38, %v613_v4  ;;  %vm612_vm9 = vcmp.eq.f32.partialorder %v611_v5, 8.507059e+37 }
 0xe5b   :  { %v1466_v61 = vpop.eup %1465 }
 0xe5c   :  { %v603_v62 = vmul.f32 %v1466_v61, %v601_v60  ;;  %vm608_vm6 = vweird.f32 %v1466_v61  ;;  %v1468_v6 = vpop.eup %1467 }
 0xe5d   :  { %vm609_vm8 = vmor %vm607_vm7, %vm608_vm6  ;;  %v889_v9 = vadd.f32 1.0, %v1468_v6 }
 0xe5e   :  { %v604_v0 = vsub.f32 1.0, %v603_v62 }
 0xe5f   :  { %1469 = vrcp.f32 %v889_v9  ;;  %v901_v29 = vand.u32 2147483648, %v889_v9  ;;  %vm895_vm11 = vweird.f32 %v889_v9  ;;  %v899_v31 = vand.u32 2147483647, %v889_v9 }
 0xe60   :  { %v605_v2 = vmul.f32 %v1466_v61, %v604_v0 }
 0xe61   :  { %v902_v35 = vor.u32 1.1754944e-38, %v901_v29  ;;  %vm900_vm13 = vcmp.eq.f32.partialorder %v899_v31, 8.507059e+37 }
 0xe62   :  { %v606_v3 = vadd.f32 %v1466_v61, %v605_v2 }
 0xe64   :  { %v610_v7 = vsel %vm609_vm8, %v1466_v61, %v606_v3 }
 0xe65   :  { %v615_v12 = vsel %vm612_vm9, %v614_v8, %v610_v7  ;;  %v1470_v16 = vpop.eup %1469 }
 0xe66   :  { %v891_v19 = vmul.f32 %v1470_v16, %v889_v9  ;;  %vm896_vm10 = vweird.f32 %v1470_v16  ;;  %v627_v21 = vsub.f32 1.0, %v615_v12  ;;  %v635_v48 = vmul.f32 %v633_v47, %v615_v12 }
 0xe67   :  { %vm897_vm12 = vmor %vm895_vm11, %vm896_vm10 }
 0xe68   :  { %v892_v20 = vsub.f32 1.0, %v891_v19 }
 0xe6a   :  { %v893_v27 = vmul.f32 %v1470_v16, %v892_v20 }
 0xe6c   :  { %v894_v28 = vadd.f32 %v1470_v16, %v893_v27 }
 0xe6e   :  { %v898_v33 = vsel %vm897_vm12, %v1470_v16, %v894_v28 }
 0xe6f   :  { %v903_v37 = vsel %vm900_vm13, %v902_v35, %v898_v33 }
 0xe70   :  { %v915_v54 = vsub.f32 1.0, %v903_v37  ;;  %v923_v57 = vmul.f32 %v921_v55, %v903_v37 }
 0xea0   :  { %v618_v11 = vpop.permute.xlu2 %617 }
 0xea1   :  { %v620_v15 = vmul.f32 %v618_v11, %v615_v12 }
 0xea3   :  { %622 = vrot.lane.b32.xlu1 %v620_v15, %s1571_s26 }
 0xec0   :  { %v906_v23 = vpop.permute.xlu0 %905 }
 0xec1   :  { %v908_v38 = vmul.f32 %v906_v23, %v903_v37 }
 0xec3   :  { %910 = vrot.lane.b32.xlu2 %v908_v38, %s1571_s26 }
 0xf15   :  { %v623_v40 = vpop.permute.xlu1 %622 }
 0xf16   :  { %v625_v41 = vadd.f32 %v623_v40, %v1673_v13 }
 0xf18   :  { %1471 = vtanh.f32 %v625_v41 }
 0xf1d   :  { %v911_v42 = vpop.permute.xlu2 %910 }
 0xf1e   :  { %v1472_v43 = vpop.eup %1471  ;;  %v913_v44 = vadd.f32 %v911_v42, %v1801_v10 }
 0xf1f   :  { %629 = vrot.lane.b32.xlu0 %v1472_v43, %s1572_s27 }
 0xf20   :  { %1473 = vtanh.f32 %v913_v44 }
 0xf26   :  { %v1474_v45 = vpop.eup %1473 }
 0xf27   :  { %917 = vrot.lane.b32.xlu1 %v1474_v45, %s1572_s27 }
 0xf91   :  { %v630_v49 = vpop.permute.xlu0 %629 }
 0xf92   :  { %v632_v51 = vmul.f32 %v630_v49, %v627_v21 }
 0xf94   :  { %v1871_v52 = vadd.f32 %v635_v48, %v632_v51 }
 0xf96   :  { %v642_v53 = vrot.slane %v1871_v52, 4 }
 0xf98   :  { %643 = vrot.lane.b32.xlu2 %v642_v53, %s1572_s27 }
 0xf99   :  { %v918_v56 = vpop.permute.xlu1 %917 }
 0xf9a   :  { %v920_v58 = vmul.f32 %v918_v56, %v915_v54 }
 0xf9c   :  { %v1876_v59 = vadd.f32 %v923_v57, %v920_v58 }
 0xf9e   :  { %v930_v60 = vrot.slane %v1876_v59, 2 }
 0xfa0   :  { %931 = vrot.lane.b32.xlu0 %v930_v60, %s1572_s27 }
 0xff2   :  { %v644_v61 = vpop.permute.xlu2 %643 }
 0xff3   :  { %1381 = vmatmul.msk.f32.vlgmr.msrb.gmra.mxu3 %vm83_vm0, %v644_v61 }
 0xff4   :  { %1233 = vmatpush.msrb.mxu3 %v1758_v24 }
 0xff6   :  { %1234 = vmatpush.msrb.mxu3 %v1760_v18 }
 0xff8   :  { %1235 = vmatpush.msrb.mxu3 %v1764_v25 }
 0xffa   :  { %1236 = vmatpush.msrb.mxu3 %v1770_v26 }
0x1012   :  { %v932_v14 = vpop.permute.xlu0 %931 }
0x1013   :  { %1384 = vmatmul.msk.f32.vlgmr.msra.gmra.mxu3 %vm83_vm0, %v932_v14 }
0x1076   :  { %v1886_v62 = vpop.f32.mrf.mxu3 }
0x1096   :  { %v952_v63 = vpop.f32.mrf.mxu3 }
0x1097   :  { %v953_v0 = vadd.f32 %v1790_v30, %v952_v63 }
0x1099   :  { %976 = vrot.lane.b32.xlu1 %v953_v0, %s1571_s26  ;;  %v955_v1 = vadd.f32 %v953_v0, %v1801_v10 }
0x109b   :  { %v956_v2 = vsub.f32 0.0, %v955_v1 }
0x109d   :  { %v957_v24 = vmul.f32 1.442695, %v956_v2 }
0x109f   :  { %1475 = vpow2.f32 %v957_v24 }
0x10a5   :  { %v1476_v18 = vpop.eup %1475 }
0x10a6   :  { %v959_v3 = vadd.f32 1.0, %v1476_v18 }
0x10a8   :  { %1477 = vrcp.f32 %v959_v3  ;;  %v971_v7 = vand.u32 2147483648, %v959_v3  ;;  %vm965_vm15 = vweird.f32 %v959_v3  ;;  %v969_v8 = vand.u32 2147483647, %v959_v3 }
0x10aa   :  { %v972_v11 = vor.u32 1.1754944e-38, %v971_v7  ;;  %vm970_vm2 = vcmp.eq.f32.partialorder %v969_v8, 8.507059e+37 }
0x10ae   :  { %v1478_v25 = vpop.eup %1477 }
0x10af   :  { %v961_v26 = vmul.f32 %v1478_v25, %v959_v3  ;;  %vm966_vm14 = vweird.f32 %v1478_v25 }
0x10b0   :  { %vm967_vm1 = vmor %vm965_vm15, %vm966_vm14 }
0x10b1   :  { %v962_v4 = vsub.f32 1.0, %v961_v26 }
0x10b3   :  { %v963_v5 = vmul.f32 %v1478_v25, %v962_v4 }
0x10b5   :  { %v964_v6 = vadd.f32 %v1478_v25, %v963_v5 }
0x10b7   :  { %v968_v9 = vsel %vm967_vm1, %v1478_v25, %v964_v6 }
0x10b8   :  { %v973_v15 = vsel %vm970_vm2, %v972_v11, %v968_v9 }
0x10b9   :  { %v986_v28 = vsub.f32 1.0, %v973_v15  ;;  %v993_v31 = vmul.f32 %v973_v15, %v930_v60 }
0x110b   :  { %v977_v12 = vpop.permute.xlu1 %976 }
0x110c   :  { %v979_v16 = vmul.f32 %v977_v12, %v973_v15 }
0x110e   :  { %981 = vrot.lane.b32.xlu2 %v979_v16, %s1571_s26 }
0x1168   :  { %v982_v19 = vpop.permute.xlu2 %981 }
0x1169   :  { %v984_v20 = vadd.f32 %v982_v19, %v1801_v10  ;;  %v1900_v10 = vadd.f32 %v1797_v34, %v1828_v36 }
0x116b   :  { %1479 = vtanh.f32 %v984_v20 }
0x1171   :  { %v1480_v27 = vpop.eup %1479 }
0x1172   :  { %988 = vrot.lane.b32.xlu0 %v1480_v27, %s1572_s27 }
0x11e4   :  { %v989_v29 = vpop.permute.xlu0 %988 }
0x11e5   :  { %v991_v33 = vmul.f32 %v989_v29, %v986_v28 }
0x11e7   :  { %v994_v35 = vadd.f32 %v993_v31, %v991_v33 }
0x11e9   :  { %996 = vrot.lane.b32.xlu1 %v994_v35, %s1572_s27  ;;  %v1061_v54 = vrot.slane %v994_v35, 2 }
0x125b   :  { %v997_v23 = vpop.permute.xlu1 %996 }
0x125c   :  { %999 = vst.msk [vmem:[#allocation3 + $0x8] sm:$0x3] %vm208_vm5, %v997_v23  ;;  %1385 = vmatmul.msk.f32.vlgmr.msrb.gmra.mxu0 %vm83_vm0, %v997_v23 }
0x12d9   :  { %v1019_v37 = vpop.f32.mrf.mxu0 }
0x12da   :  { %v1020_v38 = vadd.f32 %v1790_v30, %v1019_v37 }
0x12dc   :  { %v1023_v40 = vrot.slane %v1020_v38, 2 }
0x12de   :  { %v1025_v41 = vadd.f32 %v1023_v40, %v1900_v10  ;;  %1045 = vrot.lane.b32.xlu2 %v1023_v40, %s1571_s26 }
0x12e0   :  { %v1026_v42 = vsub.f32 0.0, %v1025_v41 }
0x12e2   :  { %v1027_v43 = vmul.f32 1.442695, %v1026_v42 }
0x12e4   :  { %1481 = vpow2.f32 %v1027_v43 }
0x12ea   :  { %v1482_v44 = vpop.eup %1481 }
0x12eb   :  { %v1029_v45 = vadd.f32 1.0, %v1482_v44 }
0x12ed   :  { %1483 = vrcp.f32 %v1029_v45  ;;  %v1041_v48 = vand.u32 2147483648, %v1029_v45  ;;  %v1039_v53 = vand.u32 2147483647, %v1029_v45  ;;  %vm1035_vm4 = vweird.f32 %v1029_v45 }
0x12ef   :  { %v1042_v36 = vor.u32 1.1754944e-38, %v1041_v48  ;;  %vm1040_vm7 = vcmp.eq.f32.partialorder %v1039_v53, 8.507059e+37 }
0x12f3   :  { %v1484_v21 = vpop.eup %1483 }
0x12f4   :  { %v1031_v47 = vmul.f32 %v1484_v21, %v1029_v45  ;;  %vm1036_vm3 = vweird.f32 %v1484_v21 }
0x12f5   :  { %vm1037_vm6 = vmor %vm1035_vm4, %vm1036_vm3 }
0x12f6   :  { %v1032_v49 = vsub.f32 1.0, %v1031_v47 }
0x12f8   :  { %v1033_v51 = vmul.f32 %v1484_v21, %v1032_v49 }
0x12fa   :  { %v1034_v34 = vadd.f32 %v1484_v21, %v1033_v51 }
0x12fc   :  { %v1038_v55 = vsel %vm1037_vm6, %v1484_v21, %v1034_v34 }
0x12fd   :  { %v1043_v56 = vsel %vm1040_vm7, %v1042_v36, %v1038_v55 }
0x12fe   :  { %v1063_v57 = vmul.f32 %v1061_v54, %v1043_v56  ;;  %v1055_v0 = vsub.f32 1.0, %v1043_v56 }
0x1338   :  { %v1046_v58 = vpop.permute.xlu2 %1045 }
0x1339   :  { %v1048_v60 = vmul.f32 %v1046_v58, %v1043_v56 }
0x133b   :  { %1050 = vrot.lane.b32.xlu0 %v1048_v60, %s1571_s26 }
0x13ad   :  { %v1051_v61 = vpop.permute.xlu0 %1050 }
0x13ae   :  { %v1053_v14 = vadd.f32 %v1051_v61, %v1900_v10 }
0x13b0   :  { %1485 = vtanh.f32 %v1053_v14 }
0x13b6   :  { %v1486_v63 = vpop.eup %1485 }
0x13b7   :  { %1057 = vrot.lane.b32.xlu1 %v1486_v63, %s1572_s27 }
0x1429   :  { %v1058_v1 = vpop.permute.xlu1 %1057 }
0x142a   :  { %v1060_v2 = vmul.f32 %v1058_v1, %v1055_v0 }
0x142c   :  { %v1907_v24 = vadd.f32 %v1063_v57, %v1060_v2 }
0x142e   :  { %v1070_v18 = vrot.slane %v1907_v24, 6  ;;  %v1134_v41 = vrot.slane %v1907_v24, 2 }
0x1430   :  { %1071 = vrot.lane.b32.xlu2 %v1070_v18, %s1572_s27 }
0x148a   :  { %v1072_v3 = vpop.permute.xlu2 %1071 }
0x148b   :  { %1386 = vmatmul.msk.f32.vlgmr.msrb.gmra.mxu1 %vm83_vm0, %v1072_v3 }
0x1508   :  { %v1092_v25 = vpop.f32.mrf.mxu1 }
0x1509   :  { %v1093_v26 = vadd.f32 %v1790_v30, %v1092_v25 }
0x150b   :  { %v1096_v4 = vrot.slane %v1093_v26, 4 }
0x150d   :  { %1118 = vrot.lane.b32.xlu0 %v1096_v4, %s1571_s26  ;;  %v1098_v5 = vadd.f32 %v1096_v4, %v1900_v10 }
0x150f   :  { %v1099_v6 = vsub.f32 0.0, %v1098_v5  ;;  %v1511_v5 = vld [vmem:[#allocation6] ss:$0 sm:$0xff] }
0x1511   :  { %v1100_v7 = vmul.f32 1.442695, %v1099_v6  ;;  %v665_v6 = vadd.f32 %v1511_v5, %v1886_v62 }
0x1513   :  { %1487 = vpow2.f32 %v1100_v7  ;;  %v668_v7 = vrot.slane %v665_v6, 2  ;;  %v706_v6 = vrot.slane %v1871_v52, 6 }
0x1515   :  { %v670_v62 = vadd.f32 %v668_v7, %v1673_v13 }
0x1519   :  { %v1488_v8 = vpop.eup %1487 }
0x151a   :  { %v1102_v9 = vadd.f32 1.0, %v1488_v8 }
0x151c   :  { %1489 = vrcp.f32 %v1102_v9  ;;  %v1114_v20 = vand.u32 2147483648, %v1102_v9  ;;  %vm1108_vm9 = vweird.f32 %v1102_v9  ;;  %v1112_v27 = vand.u32 2147483647, %v1102_v9 }
0x151e   :  { %v1115_v29 = vor.u32 1.1754944e-38, %v1114_v20  ;;  %vm1113_vm11 = vcmp.eq.f32.partialorder %v1112_v27, 8.507059e+37  ;;  %v671_v27 = vsub.f32 0.0, %v670_v62 }
0x1522   :  { %v1490_v11 = vpop.eup %1489 }
0x1523   :  { %v1104_v12 = vmul.f32 %v1490_v11, %v1102_v9  ;;  %vm1109_vm8 = vweird.f32 %v1490_v11 }
0x1524   :  { %vm1110_vm10 = vmor %vm1108_vm9, %vm1109_vm8 }
0x1525   :  { %v1105_v15 = vsub.f32 1.0, %v1104_v12 }
0x1527   :  { %v1106_v16 = vmul.f32 %v1490_v11, %v1105_v15 }
0x1529   :  { %v1107_v19 = vadd.f32 %v1490_v11, %v1106_v16 }
0x152b   :  { %v1111_v28 = vsel %vm1110_vm10, %v1490_v11, %v1107_v19  ;;  %vm279_vm10 = vcmask 257026  }
0x152c   :  { %v1116_v33 = vsel %vm1113_vm11, %v1115_v29, %v1111_v28  ;;  %v672_v28 = vmul.f32 1.442695, %v671_v27  ;;  %vm427_vm11 = vcmask 261126  }
0x152d   :  { %v1128_v40 = vsub.f32 1.0, %v1116_v33  ;;  %v1136_v43 = vmul.f32 %v1134_v41, %v1116_v33 }
0x157f   :  { %v1119_v31 = vpop.permute.xlu0 %1118 }
0x1580   :  { %v1121_v35 = vmul.f32 %v1119_v31, %v1116_v33 }
0x1582   :  { %1123 = vrot.lane.b32.xlu1 %v1121_v35, %s1571_s26 }
0x15f4   :  { %v1124_v23 = vpop.permute.xlu1 %1123 }
0x15f5   :  { %v1126_v37 = vadd.f32 %v1124_v23, %v1900_v10 }
0x15f7   :  { %1491 = vtanh.f32 %v1126_v37 }
0x15fd   :  { %v1492_v38 = vpop.eup %1491 }
0x15fe   :  { %1130 = vrot.lane.b32.xlu2 %v1492_v38, %s1572_s27 }
0x1658   :  { %v1131_v42 = vpop.permute.xlu2 %1130 }
0x1659   :  { %v1133_v44 = vmul.f32 %v1131_v42, %v1128_v40 }
0x165b   :  { %v1919_v45 = vadd.f32 %v1136_v43, %v1133_v44 }
0x165d   :  { %v1143_v21 = vrot.slane %v1919_v45, 4  ;;  %v1207_v9 = vrot.slane %v1919_v45, 2 }
0x165f   :  { %1144 = vrot.lane.b32.xlu0 %v1143_v21, %s1572_s27 }
0x16d1   :  { %v1145_v47 = vpop.permute.xlu0 %1144 }
0x16d2   :  { %1387 = vmatmul.msk.f32.vlgmr.msrb.gmra.mxu2 %vm83_vm0, %v1145_v47 }
0x1755   :  { %v1165_v49 = vpop.f32.mrf.mxu2 }
0x1756   :  { %v1166_v48 = vadd.f32 %v1790_v30, %v1165_v49 }
0x1758   :  { %v1169_v51 = vrot.slane %v1166_v48, 6 }
0x175a   :  { %1191 = vrot.lane.b32.xlu1 %v1169_v51, %s1571_s26  ;;  %v1171_v53 = vadd.f32 %v1169_v51, %v1900_v10 }
0x175c   :  { %v1172_v34 = vsub.f32 0.0, %v1171_v53 }
0x175e   :  { %v1173_v36 = vmul.f32 1.442695, %v1172_v34 }
0x1760   :  { %1493 = vpow2.f32 %v1173_v36 }
0x1766   :  { %v1494_v54 = vpop.eup %1493 }
0x1767   :  { %v1175_v55 = vadd.f32 1.0, %v1494_v54 }
0x1769   :  { %1495 = vrcp.f32 %v1175_v55  ;;  %v1187_v14 = vand.u32 2147483648, %v1175_v55  ;;  %vm1181_vm13 = vweird.f32 %v1175_v55  ;;  %v1185_v63 = vand.u32 2147483647, %v1175_v55 }
0x176b   :  { %v1188_v1 = vor.u32 1.1754944e-38, %v1187_v14  ;;  %vm1186_vm15 = vcmp.eq.f32.partialorder %v1185_v63, 8.507059e+37 }
0x176f   :  { %v1496_v56 = vpop.eup %1495 }
0x1770   :  { %v1177_v57 = vmul.f32 %v1496_v56, %v1175_v55  ;;  %vm1182_vm12 = vweird.f32 %v1496_v56 }
0x1771   :  { %vm1183_vm14 = vmor %vm1181_vm13, %vm1182_vm12  ;;  %vm353_vm12 = vcmask 259076   ;;  %vm1362_vm13 = vcmask 64512  }
0x1772   :  { %v1178_v58 = vsub.f32 1.0, %v1177_v57 }
0x1774   :  { %v1179_v60 = vmul.f32 %v1496_v56, %v1178_v58 }
0x1776   :  { %v1180_v61 = vadd.f32 %v1496_v56, %v1179_v60 }
0x1778   :  { %v1184_v0 = vsel %vm1183_vm14, %v1496_v56, %v1180_v61 }
0x1779   :  { %v1189_v18 = vsel %vm1186_vm15, %v1188_v1, %v1184_v0 }
0x177a   :  { %v1201_v8 = vsub.f32 1.0, %v1189_v18  ;;  %v1209_v12 = vmul.f32 %v1207_v9, %v1189_v18 }
0x17cc   :  { %v1192_v2 = vpop.permute.xlu1 %1191 }
0x17cd   :  { %v1194_v3 = vmul.f32 %v1192_v2, %v1189_v18 }
0x17cf   :  { %1196 = vrot.lane.b32.xlu2 %v1194_v3, %s1571_s26 }
0x1829   :  { %v1197_v25 = vpop.permute.xlu2 %1196 }
0x182a   :  { %v1199_v26 = vadd.f32 %v1197_v25, %v1900_v10 }
0x182c   :  { %1497 = vtanh.f32 %v1199_v26 }
0x182d   :  { %1499 = vpow2.f32 %v672_v28 }
0x1832   :  { %v1498_v4 = vpop.eup %1497 }
0x1833   :  { %1203 = vrot.lane.b32.xlu0 %v1498_v4, %s1572_s27  ;;  %v1500_v29 = vpop.eup %1499 }
0x1834   :  { %v674_v31 = vadd.f32 1.0, %v1500_v29 }
0x1836   :  { %1501 = vrcp.f32 %v674_v31  ;;  %v686_v42 = vand.u32 2147483648, %v674_v31  ;;  %vm680_vm2 = vweird.f32 %v674_v31  ;;  %v684_v43 = vand.u32 2147483647, %v674_v31 }
0x1838   :  { %v687_v21 = vor.u32 1.1754944e-38, %v686_v42  ;;  %vm685_vm4 = vcmp.eq.f32.partialorder %v684_v43, 8.507059e+37 }
0x183b   :  { %690 = vrot.lane.b32.xlu0 %v668_v7, %s1571_s26 }
0x183c   :  { %v1502_v33 = vpop.eup %1501 }
0x183d   :  { %v676_v35 = vmul.f32 %v1502_v33, %v674_v31  ;;  %vm681_vm1 = vweird.f32 %v1502_v33 }
0x183e   :  { %vm682_vm3 = vmor %vm680_vm2, %vm681_vm1 }
0x183f   :  { %v677_v23 = vsub.f32 1.0, %v676_v35 }
0x1841   :  { %v678_v37 = vmul.f32 %v1502_v33, %v677_v23  ;;  %v1293_v23 = vld [vmem:[%s2032_s5 + $0x38] sm:$0xff] }
0x1842   :  { %1316 = vmatpush.msra.mxu0 %v1293_v23 }
0x1843   :  { %v679_v40 = vadd.f32 %v1502_v33, %v678_v37  ;;  %v1291_v37 = vld [vmem:[%s2032_s5 + $0x28] sm:$0xff] }
0x1845   :  { %v683_v44 = vsel %vm682_vm3, %v1502_v33, %v679_v40 }
0x1846   :  { %v688_v49 = vsel %vm685_vm4, %v687_v21, %v683_v44  ;;  %v1414_v44 = vld [vmem:[%s2033_s6] ss:$0 sm:$0xff] }
0x1847   :  { %v700_v5 = vsub.f32 1.0, %v688_v49  ;;  %v708_v7 = vmul.f32 %v706_v6, %v688_v49 }
0x18a5   :  { %v1204_v11 = vpop.permute.xlu0 %1203 }
0x18a6   :  { %v1206_v15 = vmul.f32 %v1204_v11, %v1201_v8  ;;  %v1288_v11 = vld [vmem:[%s2032_s5 + $0x10] sm:$0xff] }
0x18a8   :  { %v1933_v16 = vadd.f32 %v1209_v12, %v1206_v15 }
0x18aa   :  { %v1216_v19 = vrot.slane %v1933_v16, 2 }
0x18ac   :  { %1217 = vrot.lane.b32.xlu1 %v1216_v19, %s1572_s27 }
0x18ad   :  { %v691_v47 = vpop.permute.xlu0 %690 }
0x18ae   :  { %v693_v48 = vmul.f32 %v691_v47, %v688_v49 }
0x191e   :  { %v1218_v20 = vpop.permute.xlu1 %1217 }
0x191f   :  { %1388 = vmatmul.msk.f32.vlgmr.msrb.gmra.mxu3 %vm83_vm0, %v1218_v20 }
0x19a2   :  { %v1238_v38 = vpop.f32.mrf.mxu3 }
0x19a3   :  { %v1239_v41 = vadd.f32 %v1790_v30, %v1238_v38  ;;  %v1290_v38 = vld [vmem:[%s2032_s5 + $0x20] sm:$0xff] }
0x19a5   :  { %1262 = vrot.lane.b32.xlu2 %v1239_v41, %s1571_s26  ;;  %v1241_v30 = vadd.f32 %v1239_v41, %v1900_v10 }
0x19a7   :  { %v1242_v51 = vsub.f32 0.0, %v1241_v30 }
0x19a9   :  { %v1243_v53 = vmul.f32 1.442695, %v1242_v51 }
0x19ab   :  { %1503 = vpow2.f32 %v1243_v53 }
0x19ad   :  { %695 = vrot.lane.b32.xlu2 %v693_v48, %s1571_s26 }
0x19b1   :  { %v1504_v34 = vpop.eup %1503 }
0x19b2   :  { %v1245_v36 = vadd.f32 1.0, %v1504_v34 }
0x19b4   :  { %1505 = vrcp.f32 %v1245_v36  ;;  %v1257_v60 = vand.u32 2147483648, %v1245_v36  ;;  %vm1251_vm7 = vweird.f32 %v1245_v36 }
0x19b5   :  { %276 = vrot.lane.b32.xlu2 %v1728_v17, %s1572_s27  ;;  %v1255_v17 = vand.u32 2147483647, %v1245_v36 }
0x19b7   :  { %vm1256_vm9 = vcmp.eq.f32.partialorder %v1255_v17, 8.507059e+37 }
0x19ba   :  { %v1506_v54 = vpop.eup %1505 }
0x19bb   :  { %v1247_v55 = vmul.f32 %v1506_v54, %v1245_v36  ;;  %vm1252_vm6 = vweird.f32 %v1506_v54 }
0x19bc   :  { %vm1253_vm8 = vmor %vm1251_vm7, %vm1252_vm6 }
0x19bd   :  { %1066 = vrot.lane.b32.xlu2 %v1907_v24, %s1572_s27  ;;  %v1248_v56 = vsub.f32 1.0, %v1247_v55  ;;  %v1258_v24 = vor.u32 1.1754944e-38, %v1257_v60 }
0x19bf   :  { %v1249_v57 = vmul.f32 %v1506_v54, %v1248_v56 }
0x19c1   :  { %v1250_v58 = vadd.f32 %v1506_v54, %v1249_v57 }
0x19c3   :  { %v1254_v61 = vsel %vm1253_vm8, %v1506_v54, %v1250_v58 }
0x19c4   :  { %v1259_v63 = vsel %vm1256_vm9, %v1258_v24, %v1254_v61 }
0x19c5   :  { %v1272_v15 = vsub.f32 1.0, %v1259_v63  ;;  %v1279_v62 = vmul.f32 %v1259_v63, %v1216_v19 }
0x19ff   :  { %v1263_v14 = vpop.permute.xlu2 %1262 }
0x1a00   :  { %v1265_v0 = vmul.f32 %v1263_v14, %v1259_v63 }
0x1a02   :  { %1267 = vrot.lane.b32.xlu1 %v1265_v0, %s1571_s26 }
0x1a07   :  { %v696_v1 = vpop.permute.xlu2 %695 }
0x1a08   :  { %v698_v2 = vadd.f32 %v696_v1, %v1673_v13 }
0x1a0a   :  { %1507 = vtanh.f32 %v698_v2 }
0x1a0f   :  { %v277_v18 = vpop.permute.xlu2 %276 }
0x1a10   :  { %v1508_v3 = vpop.eup %1507  ;;  %280 = vst.msk [vmem:[#allocation2] sm:$0xc] %vm279_vm10, %v277_v18 }
0x1a11   :  { %702 = vrot.lane.b32.xlu1 %v1508_v3, %s1572_s27 }
0x1a17   :  { %v1067_v25 = vpop.permute.xlu2 %1066 }
0x1a18   :  { %1069 = vst.msk [vmem:[#allocation3] sm:$0xc0] %vm427_vm11, %v1067_v25 }
0x1a19   :  { %424 = vrot.lane.b32.xlu1 %v1752_v22, %s1572_s27 }
0x1a21   :  { %1212 = vrot.lane.b32.xlu1 %v1933_v16, %s1572_s27 }
0x1a29   :  { %638 = vrot.lane.b32.xlu1 %v1871_v52, %s1572_s27 }
0x1a31   :  { %853 = vrot.lane.b32.xlu1 %v1848_v46, %s1572_s27 }
0x1a74   :  { %v1268_v13 = vpop.permute.xlu1 %1267 }
0x1a75   :  { %v1270_v26 = vadd.f32 %v1268_v13, %v1900_v10 }
0x1a77   :  { %1509 = vtanh.f32 %v1270_v26 }
0x1a7d   :  { %v1510_v4 = vpop.eup %1509 }
0x1a7e   :  { %1274 = vrot.lane.b32.xlu0 %v1510_v4, %s1572_s27 }
0x1a83   :  { %v703_v22 = vpop.permute.xlu1 %702 }
0x1a84   :  { %v705_v8 = vmul.f32 %v703_v22, %v700_v5 }
0x1a86   :  { %v709_v9 = vadd.f32 %v708_v7, %v705_v8  ;;  %350 = vrot.lane.b32.xlu0 %v1740_v50, %s1572_s27 }
0x1a88   :  { %711 = vrot.lane.b32.xlu2 %v709_v9, %s1572_s27 }
0x1a8b   :  { %v425_v46 = vpop.permute.xlu1 %424 }
0x1a8c   :  { %428 = vst.msk [vmem:[#allocation2] sm:$0xc0] %vm427_vm11, %v425_v46 }
0x1a8e   :  { %1139 = vrot.lane.b32.xlu0 %v1919_v45, %s1572_s27  ;;  %v1289_v45 = vld [vmem:[%s2032_s5 + $0x18] sm:$0xff] }
0x1a8f   :  { %1345 = vmatpush.msra.mxu1 %v1289_v45 }
0x1a91   :  { %1346 = vmatpush.msra.mxu1 %v1288_v11 }
0x1a93   :  { %v1213_v10 = vpop.permute.xlu1 %1212 }
0x1a94   :  { %1215 = vst.msk [vmem:[#allocation3] sm:$0xc] %vm279_vm10, %v1213_v10 }
0x1a96   :  { %565 = vrot.lane.b32.xlu0 %v1843_v39, %s1572_s27  ;;  %v1287_v39 = vld [vmem:[%s2032_s5 + $0x8] sm:$0xff] }
0x1a97   :  { %1347 = vmatpush.msra.mxu1 %v1287_v39 }
0x1a9b   :  { %v639_v52 = vpop.permute.xlu1 %638 }
0x1a9c   :  { %641 = vst.msk [vmem:[#allocation2 + $0x8] sm:$0x30] %vm353_vm12, %v639_v52 }
0x1a9e   :  { %780 = vrot.lane.b32.xlu0 %v1817_v32, %s1572_s27  ;;  %v1286_v32 = vld [vmem:[%s2032_s5] sm:$0xff] }
0x1a9f   :  { %1348 = vmatpush.msra.mxu1 %v1286_v32 }
0x1aa3   :  { %v854_v50 = vpop.permute.xlu1 %853 }
0x1aa4   :  { %856 = vst.msk [vmem:[#allocation3 + $0x8] sm:$0x30] %vm353_vm12, %v854_v50 }
0x1ae2   :  { %v712_v12 = vpop.permute.xlu2 %711 }
0x1ae3   :  { %714 = vst.msk [vmem:[#allocation2 + $0x8] sm:$0xc0] %vm427_vm11, %v712_v12 }
0x1af0   :  { %v1275_v20 = vpop.permute.xlu0 %1274 }
0x1af1   :  { %v1277_v27 = vmul.f32 %v1275_v20, %v1272_v15 }
0x1af3   :  { %v1280_v28 = vadd.f32 %v1279_v62, %v1277_v27 }
0x1af5   :  { %1282 = vrot.lane.b32.xlu2 %v1280_v28, %s1572_s27 }
0x1af8   :  { %v351_v29 = vpop.permute.xlu0 %350 }
0x1af9   :  { %354 = vst.msk [vmem:[#allocation2] sm:$0x30] %vm353_vm12, %v351_v29 }
0x1afd   :  { %926 = vrot.lane.b32.xlu2 %v1876_v59, %s1572_s27  ;;  %v1292_v59 = vld [vmem:[%s2032_s5 + $0x30] sm:$0xff] }
0x1afe   :  { %1317 = vmatpush.msra.mxu0 %v1292_v59 }
0x1b00   :  { %v1140_v31 = vpop.permute.xlu0 %1139  ;;  %v1294_v33 = vld [vmem:[#allocation2] sm:$0xff]  ;;  %1318 = vmatpush.msra.mxu0 %v1291_v37 }
0x1b01   :  { %1142 = vst.msk [vmem:[#allocation3] sm:$0x30] %vm353_vm12, %v1140_v31  ;;  %1391 = vmatmul.msk.f32.vlgmr.msra.gmra.mxu1 %vm83_vm0, %v1294_v33 }
0x1b02   :  { %1319 = vmatpush.msra.mxu0 %v1290_v38 }
0x1b08   :  { %v566_v35 = vpop.permute.xlu0 %565 }
0x1b09   :  { %568 = vst.msk [vmem:[#allocation2 + $0x8] sm:$0xc] %vm279_vm10, %v566_v35 }
0x1b10   :  { %v781_v16 = vpop.permute.xlu0 %780  ;;  %v1295_v19 = vld [vmem:[#allocation2 + $0x8] sm:$0xff] }
0x1b11   :  { %783 = vst.msk [vmem:[#allocation3 + $0x8] sm:$0xc0] %vm427_vm11, %v781_v16  ;;  %1392 = vmatmul.msk.f32.gmra.mxu1 %vm83_vm0, %v1295_v19 }
0x1b4f   :  { %v1283_v40 = vpop.permute.xlu2 %1282 }
0x1b50   :  { %1285 = vst.msk [vmem:[#allocation3] sm:$0x3] %vm208_vm5, %v1283_v40 }
0x1b57   :  { %v927_v41 = vpop.permute.xlu2 %926  ;;  %v1296_v42 = vld [vmem:[#allocation3] sm:$0xff] }
0x1b58   :  { %929 = vst.msk [vmem:[#allocation3 + $0x8] sm:$0xc] %vm279_vm10, %v927_v41  ;;  %1389 = vmatmul.msk.f32.vlgmr.msra.gmra.mxu0 %vm83_vm0, %v1296_v42 }
0x1b5f   :  { %v1297_v43 = vld [vmem:[#allocation3 + $0x8] sm:$0xff] }
0x1b60   :  { %1390 = vmatmul.msk.f32.gmra.mxu0 %vm83_vm0, %v1297_v43 }
0x1b7e   :  { %v1350_v21 = vpop.f32.mrf.mxu1 }
0x1b8e   :  { %v1353_v30 = vpop.f32.mrf.mxu1 }
0x1bd5   :  { %v1321_v47 = vpop.f32.mrf.mxu0 }
0x1bd6   :  { %v1351_v49 = vadd.f32 %v1350_v21, %v1321_v47 }
0x1bd8   :  { %v1360_v48 = vadd.f32 %v1414_v44, %v1351_v49 }
0x1bda   :  { %1363 = vst.msk [vmem:[%s2034_s7] sm:$0xff] %vm1362_vm13, %v1360_v48 }
0x1bdd   :  { %v1324_v51 = vpop.f32.mrf.mxu0 }
0x1bde   :  { %v1354_v53 = vadd.f32 %v1353_v30, %v1324_v51 }
0x1be0   :  { %v1361_v34 = vadd.f32 %v1414_v44, %v1354_v53 }
0x1be2   :  { %1364 = vst.msk [vmem:[%s2034_s7 + $0x8] sm:$0xff] %vm1362_vm13, %v1361_v34 }
0x1be3   :  { %1369 = vsyncpa [#allocation5], 1 }
0x1be4   :  { %1370 = vsyncpa [#allocation7], 1 }

</bundles_post_ra>
